<compile_context>
chip_gen: v6e
topology: v6e:2x2x1
jax: 0.10.0
libtpu: 0.0.40
codegen_flags: <defaults>
</compile_context>

<pallas_src>
import math
from collections import OrderedDict

import jax
import jax.numpy as jnp
from jax import lax
from jax.experimental import pallas as pl
from jax.experimental.pallas import tpu as pltpu

LANE = 128          # lanes per vreg
CHUNK = 8           # sublane rows per inner chunk (1 f32 vreg per intermediate)
R_TILE_MAX = 1024   # max rows per DMA tile (1024*128*4B = 512 KiB per block)
EPS = 1e-30
LEAK = 0.2


# ---------------------------------------------------------------------------
# Fused Pallas kernel: per-sample generator GAN loss through both 1x1-conv
# discriminators.  grid = (branch, sample, pixel_tile).
# ---------------------------------------------------------------------------
def make_fused_g_kernel(hid_m: int, hid_a: int, num_chunks: int, unroll):
    def kernel(x_ref, w1m_ref, b1m_ref, w2m_ref, b2m_ref,
               w1a_ref, b1a_ref, w2a_ref, b2a_ref, o_ref):
        branch = pl.program_id(0)
        t = pl.program_id(2)

        @pl.when(t == 0)
        def _init():
            o_ref[...] = jnp.zeros_like(o_ref)

        def run_chunks(pixel_loss_fn):
            # Small-row chunks keep every intermediate at ~1 vreg (no spills).
            def body(c, acc):
                i0 = pl.multiple_of(c * CHUNK, CHUNK)
                x = x_ref[pl.ds(i0, CHUNK), :]          # (CHUNK, 128) pixel chunk
                return acc + pixel_loss_fn(x)
            return lax.fori_loop(0, num_chunks, body,
                                 jnp.zeros((CHUNK, LANE), jnp.float32),
                                 unroll=unroll)

        def softplus_neg(logit, nb2):
            # numerically stable softplus(-(logit + b2)), nb2 == -b2
            z = nb2 - logit
            return jnp.maximum(z, 0.0) + jnp.log(1.0 + jnp.exp(-jnp.abs(z)))

        @pl.when(branch == 0)
        def _main_branch():
            # prob2entropy input; the -1/ln(2) constant is pre-folded into W1.
            # SMEM scalar reads hoisted out of the hot loop.
            w10 = [w1m_ref[2 * k] for k in range(hid_m)]
            w11 = [w1m_ref[2 * k + 1] for k in range(hid_m)]
            b1s = [b1m_ref[k] for k in range(hid_m)]
            w2s = [w2m_ref[k] for k in range(hid_m)]
            nb2 = -b2m_ref[0]

            def pixel_loss(x):
                g0 = x * jnp.log(x + EPS)               # p * ln(p + eps)
                q = 1.0 - x
                g1 = q * jnp.log(q + EPS)
                logit = None
                for k in range(hid_m):
                    h = w10[k] * g0 + w11[k] * g1 + b1s[k]
                    h = jnp.maximum(h, LEAK * h)        # LeakyReLU(0.2)
                    hw2 = w2s[k] * h
                    logit = hw2 if logit is None else logit + hw2
                return softplus_neg(logit, nb2)

            o_ref[...] = o_ref[...] + run_chunks(pixel_loss)

        @pl.when(branch == 1)
        def _aux_branch():
            # raw probability input; the 1-p second channel is folded into
            # the (pre-computed) effective weights/bias -> 1 FMA per hidden unit.
            w1s = [w1a_ref[k] for k in range(hid_a)]
            b1s = [b1a_ref[k] for k in range(hid_a)]
            w2s = [w2a_ref[k] for k in range(hid_a)]
            nb2 = -b2a_ref[0]

            def pixel_loss(x):
                logit = None
                for k in range(hid_a):
                    h = w1s[k] * x + b1s[k]
                    h = jnp.maximum(h, LEAK * h)
                    hw2 = w2s[k] * h
                    logit = hw2 if logit is None else logit + hw2
                return softplus_neg(logit, nb2)

            o_ref[...] = o_ref[...] + run_chunks(pixel_loss)

    return kernel


def _pad_loss_const(b1_eff, w2, b2):
    """Per-pixel generator loss of a padded pixel (both folded inputs exactly 0,
    so the hidden pre-activation is just the folded bias)."""
    h = jnp.maximum(b1_eff, LEAK * b1_eff)
    logit = jnp.sum(w2 * h) + b2[0]
    z = -logit
    return jnp.maximum(z, 0.0) + jnp.log(1.0 + jnp.exp(-jnp.abs(z)))


def fused_gan_g_loss(x_main, x_aux, params_main, params_aux):
    """x_*: (N,1,H,W) probability maps.  Returns (loss_main, loss_aux), each (N,)."""
    n, c, hm, wm = x_main.shape
    na, ca, ha, wa = x_aux.shape
    assert c == 1 and ca == 1 and na == n
    hw_m, hw_a = hm * wm, ha * wa

    w1m, b1m, w2m, b2m = params_main
    w1a, b1a, w2a, b2a = params_aux
    hid_m, hid_a = w1m.shape[0], w1a.shape[0]

    # --- algebraic weight folding (scalar prep, wrapper side) ---------------
    # main branch: prob2entropy(p) = -p*log2(p+eps)/log2(2) = (-1/ln2)*p*ln(p+eps)
    w1m_eff = (w1m * (-1.0 / math.log(2.0))).astype(jnp.float32).reshape(-1)
    b1m_f = b1m.astype(jnp.float32)
    # aux branch: W1[k,0]*p + W1[k,1]*(1-p) + b1 == (W1[k,0]-W1[k,1])*p + (b1+W1[k,1])
    w1a_eff = (w1a[:, 0] - w1a[:, 1]).astype(jnp.float32)
    b1a_eff = (b1a + w1a[:, 1]).astype(jnp.float32)

    # --- lane-dense tiled pixel layout (N, r_pad, 128), shared by both branches
    r_m = -(-hw_m // LANE)
    r_a = -(-hw_a // LANE)
    r_full = max(r_m, r_a)
    r_tile = min(R_TILE_MAX, ((r_full + CHUNK - 1) // CHUNK) * CHUNK)
    num_tiles = -(-r_full // r_tile)
    r_pad = num_tiles * r_tile
    hw_pad = r_pad * LANE
    num_chunks = r_tile // CHUNK
    unroll = num_chunks if num_chunks <= 8 else 4

    def tile(x, hw):
        xf = x.reshape(n, hw).astype(jnp.float32)
        if hw_pad != hw:                       # no-pad fast path when possible
            xf = jnp.pad(xf, ((0, 0), (0, hw_pad - hw)))
        return xf.reshape(n, r_pad, LANE)

    x_all = jnp.stack([tile(x_main, hw_m), tile(x_aux, hw_a)], axis=0)

    kernel = make_fused_g_kernel(hid_m, hid_a, num_chunks, unroll)
    smem_specs = [pl.BlockSpec(memory_space=pltpu.MemorySpace.SMEM)
                  for _ in range(8)]

    out = pl.pallas_call(
        kernel,
        out_shape=jax.ShapeDtypeStruct((2, n, CHUNK, LANE), jnp.float32),
        grid=(2, n, num_tiles),
        in_specs=[pl.BlockSpec((None, None, r_tile, LANE),
                               lambda b, i, t: (b, i, t, 0))] + smem_specs,
        out_specs=pl.BlockSpec((None, None, CHUNK, LANE),
                               lambda b, i, t: (b, i, 0, 0)),
        compiler_params=pltpu.CompilerParams(
            dimension_semantics=("parallel", "parallel", "arbitrary")),
    )(x_all,
      w1m_eff, b1m_f, w2m.astype(jnp.float32), b2m.astype(jnp.float32),
      w1a_eff, b1a_eff, w2a.astype(jnp.float32), b2a.astype(jnp.float32))

    sums = out.sum(axis=(-2, -1))              # (2, n) raw sums over hw_pad pixels

    # Remove the analytically-known contribution of padded pixels, then mean.
    pad_m = hw_pad - hw_m
    pad_a = hw_pad - hw_a
    loss_main = (sums[0] - pad_m * _pad_loss_const(b1m_f, w2m, b2m)) / hw_m
    loss_aux = (sums[1] - pad_a * _pad_loss_const(b1a_eff, w2a, b2a)) / hw_a
    return loss_main, loss_aux


# ---------------------------------------------------------------------------
# _loss_G.forward equivalent (single fused pallas_call inside one jit)
# ---------------------------------------------------------------------------
def loss_G_forward(x_SM_main, x_TSM_main, x_SM_aux, x_TSM_aux, params,
                   lambda_disc_main=1.0, lambda_disc_aux=1.0):
    # TS_pred_main = prob2entropy(cat([x_TSM_main, 1-x_TSM_main]))  (in-kernel)
    # TS_pred_aux  = cat([x_TSM_aux, 1-x_TSM_aux])                  (in-kernel)
    # S_pred_* (the `real` argument) is unused by the non-saturating G objective.
    l_main, l_aux = fused_gan_g_loss(
        x_TSM_main, x_TSM_aux, params["disc_main"], params["disc_aux"])
    l_gen_main = lambda_disc_main * l_main
    l_gen_aux = lambda_disc_aux * l_aux
    l_G = l_gen_main + l_gen_aux                     # _reduce over dict values
    return OrderedDict(
        (("l_G", l_G), ("l_gen_main", l_gen_main), ("l_gen_aux", l_gen_aux)))


loss_G_forward_jit = jax.jit(loss_G_forward)


# ---------------------------------------------------------------------------
# Pure-JAX reference (numerical sanity check of the kernel)
# ---------------------------------------------------------------------------
def _ref_one(x_prob, w1, b1, w2, b2, apply_entropy):
    n, _, h, w = x_prob.shape
    p = jnp.concatenate([x_prob, 1.0 - x_prob], axis=1)          # (N,2,H,W)
    if apply_entropy:
        p = -p * jnp.log2(p + 1e-30) / math.log2(p.shape[1])
    pf = p.reshape(n, 2, h * w)                                  # (N,2,HW)
    hdn = jnp.einsum("kc,ncp->nkp", w1, pf) + b1.reshape(1, -1, 1)
    hdn = jnp.where(hdn > 0.0, hdn, 0.2 * hdn)
    logit = jnp.einsum("k,nkp->np", w2, hdn) + b2[0]
    z = -logit
    sp = jnp.maximum(z, 0.0) + jnp.log(1.0 + jnp.exp(-jnp.abs(z)))
    return sp.mean(axis=1)


def ref_forward(x_SM_main, x_TSM_main, x_SM_aux, x_TSM_aux, params,
                lambda_disc_main=1.0, lambda_disc_aux=1.0):
    m = lambda_disc_main * _ref_one(x_TSM_main, *params["disc_main"], True)
    a = lambda_disc_aux * _ref_one(x_TSM_aux, *params["disc_aux"], False)
    return OrderedDict((("l_G", m + a), ("l_gen_main", m), ("l_gen_aux", a)))


# ---------------------------------------------------------------------------
if __name__ == "__main__":
    key = jax.random.PRNGKey(0)
    k1, k2, k3, k4, kw = jax.random.split(key, 5)

    N, H, W = 2, 16, 16          # main resolution
    Ha, Wa = 8, 8                # aux resolution
    HID = 16

    # probabilistic prediction maps in (0, 1)
    x_SM_main = jax.nn.sigmoid(jax.random.normal(k1, (N, 1, H, W), jnp.float32))
    x_TSM_main = jax.nn.sigmoid(jax.random.normal(k2, (N, 1, H, W), jnp.float32))
    x_SM_aux = jax.nn.sigmoid(jax.random.normal(k3, (N, 1, Ha, Wa), jnp.float32))
    x_TSM_aux = jax.nn.sigmoid(jax.random.normal(k4, (N, 1, Ha, Wa), jnp.float32))

    # deterministic synthetic discriminator weights (1x1-conv MLP per pixel)
    def make_disc_params(k):
        ka, kb, kc = jax.random.split(k, 3)
        w1 = 0.5 * jax.random.normal(ka, (HID, 2), jnp.float32)
        b1 = 0.1 * jax.random.normal(kb, (HID,), jnp.float32)
        w2 = 0.5 * jax.random.normal(kc, (HID,), jnp.float32)
        b2 = jnp.zeros((1,), jnp.float32)
        return (w1, b1, w2, b2)

    kwm, kwa = jax.random.split(kw)
    params = {"disc_main": make_disc_params(kwm),
              "disc_aux": make_disc_params(kwa)}

    losses = loss_G_forward_jit(x_SM_main, x_TSM_main, x_SM_aux, x_TSM_aux,
                                params)
    losses = {k: jax.block_until_ready(v) for k, v in losses.items()}

    ref = ref_forward(x_SM_main, x_TSM_main, x_SM_aux, x_TSM_aux, params)
    for name in ("l_G", "l_gen_main", "l_gen_aux"):
        assert losses[name].shape == (N,)
        assert jnp.allclose(losses[name], ref[name], rtol=1e-3, atol=1e-4), (
            name, losses[name], ref[name])

    print("KERNEL_OK")
</pallas_src>

<mosaic_0001>
module attributes {stable_mosaic.version = 11 : i64} {
  func.func @kernel(%arg0: i32, %arg1: i32, %arg2: i32, %arg3: memref<1x1x8x128xf32, #tpu.memory_space<vmem>>, %arg4: memref<32xf32, #tpu.memory_space<smem>>, %arg5: memref<16xf32, #tpu.memory_space<smem>>, %arg6: memref<16xf32, #tpu.memory_space<smem>>, %arg7: memref<1xf32, #tpu.memory_space<smem>>, %arg8: memref<16xf32, #tpu.memory_space<smem>>, %arg9: memref<16xf32, #tpu.memory_space<smem>>, %arg10: memref<16xf32, #tpu.memory_space<smem>>, %arg11: memref<1xf32, #tpu.memory_space<smem>>, %arg12: memref<1x1x8x128xf32, #tpu.memory_space<vmem>>) attributes {dimension_semantics = [#tpu.dimension_semantics<parallel>, #tpu.dimension_semantics<parallel>, #tpu.dimension_semantics<arbitrary>], iteration_bounds = array<i64: 2, 2, 1>, scalar_prefetch = 0 : i64, scratch_operands = 0 : i64, tpu.core_type = #tpu.core_type<tc>, window_params = [{transform_indices = @transform_0, window_bounds = array<i64: 1, 1, 8, 128>}, {transform_indices = @transform_1, window_bounds = array<i64: 32>}, {transform_indices = @transform_2, window_bounds = array<i64: 16>}, {transform_indices = @transform_3, window_bounds = array<i64: 16>}, {transform_indices = @transform_4, window_bounds = array<i64: 1>}, {transform_indices = @transform_5, window_bounds = array<i64: 16>}, {transform_indices = @transform_6, window_bounds = array<i64: 16>}, {transform_indices = @transform_7, window_bounds = array<i64: 16>}, {transform_indices = @transform_8, window_bounds = array<i64: 1>}, {transform_indices = @transform_9, window_bounds = array<i64: 1, 1, 8, 128>}]} {
    %c0_i32 = arith.constant 0 : i32
    %0 = arith.cmpi eq, %arg2, %c0_i32 : i32
    %1 = arith.extui %0 : i1 to i32
    %c0_i32_0 = arith.constant 0 : i32
    %2 = arith.cmpi ne, %1, %c0_i32_0 : i32
    scf.if %2 {
      %cst = arith.constant 0.000000e+00 : f32
      %9 = vector.broadcast %cst : f32 to vector<8x128xf32>
      %c0 = arith.constant 0 : index
      %c0_4 = arith.constant 0 : index
      %c0_5 = arith.constant 0 : index
      %c0_6 = arith.constant 0 : index
      %10 = vector.load %arg12[%c0, %c0_4, %c0_5, %c0_6] : memref<1x1x8x128xf32, #tpu.memory_space<vmem>>, vector<1x1x8x128xf32>
      %11 = vector.shape_cast %10 : vector<1x1x8x128xf32> to vector<8x128xf32>
      %12 = vector.shape_cast %9 : vector<8x128xf32> to vector<1x1x8x128xf32>
      tpu.vector_store %arg12[%c0, %c0_4, %c0_5, %c0_6], %12 {strides = array<i32>} : memref<1x1x8x128xf32, #tpu.memory_space<vmem>>, vector<1x1x8x128xf32>,
    } else {
    }
    %c0_i32_1 = arith.constant 0 : i32
    %3 = arith.cmpi eq, %arg0, %c0_i32_1 : i32
    %4 = arith.extui %3 : i1 to i32
    %c0_i32_2 = arith.constant 0 : i32
    %5 = arith.cmpi ne, %4, %c0_i32_2 : i32
    scf.if %5 {
      %c0 = arith.constant 0 : index
      %9 = memref.load %arg4[%c0] : memref<32xf32, #tpu.memory_space<smem>>
      %c2 = arith.constant 2 : index
      %10 = memref.load %arg4[%c2] : memref<32xf32, #tpu.memory_space<smem>>
      %c4 = arith.constant 4 : index
      %11 = memref.load %arg4[%c4] : memref<32xf32, #tpu.memory_space<smem>>
      %c6 = arith.constant 6 : index
      %12 = memref.load %arg4[%c6] : memref<32xf32, #tpu.memory_space<smem>>
      %c8 = arith.constant 8 : index
      %13 = memref.load %arg4[%c8] : memref<32xf32, #tpu.memory_space<smem>>
      %c10 = arith.constant 10 : index
      %14 = memref.load %arg4[%c10] : memref<32xf32, #tpu.memory_space<smem>>
      %c12 = arith.constant 12 : index
      %15 = memref.load %arg4[%c12] : memref<32xf32, #tpu.memory_space<smem>>
      %c14 = arith.constant 14 : index
      %16 = memref.load %arg4[%c14] : memref<32xf32, #tpu.memory_space<smem>>
      %c16 = arith.constant 16 : index
      %17 = memref.load %arg4[%c16] : memref<32xf32, #tpu.memory_space<smem>>
      %c18 = arith.constant 18 : index
      %18 = memref.load %arg4[%c18] : memref<32xf32, #tpu.memory_space<smem>>
      %c20 = arith.constant 20 : index
      %19 = memref.load %arg4[%c20] : memref<32xf32, #tpu.memory_space<smem>>
      %c22 = arith.constant 22 : index
      %20 = memref.load %arg4[%c22] : memref<32xf32, #tpu.memory_space<smem>>
      %c24 = arith.constant 24 : index
      %21 = memref.load %arg4[%c24] : memref<32xf32, #tpu.memory_space<smem>>
      %c26 = arith.constant 26 : index
      %22 = memref.load %arg4[%c26] : memref<32xf32, #tpu.memory_space<smem>>
      %c28 = arith.constant 28 : index
      %23 = memref.load %arg4[%c28] : memref<32xf32, #tpu.memory_space<smem>>
      %c30 = arith.constant 30 : index
      %24 = memref.load %arg4[%c30] : memref<32xf32, #tpu.memory_space<smem>>
      %c1 = arith.constant 1 : index
      %25 = memref.load %arg4[%c1] : memref<32xf32, #tpu.memory_space<smem>>
      %c3 = arith.constant 3 : index
      %26 = memref.load %arg4[%c3] : memref<32xf32, #tpu.memory_space<smem>>
      %c5 = arith.constant 5 : index
      %27 = memref.load %arg4[%c5] : memref<32xf32, #tpu.memory_space<smem>>
      %c7 = arith.constant 7 : index
      %28 = memref.load %arg4[%c7] : memref<32xf32, #tpu.memory_space<smem>>
      %c9 = arith.constant 9 : index
      %29 = memref.load %arg4[%c9] : memref<32xf32, #tpu.memory_space<smem>>
      %c11 = arith.constant 11 : index
      %30 = memref.load %arg4[%c11] : memref<32xf32, #tpu.memory_space<smem>>
      %c13 = arith.constant 13 : index
      %31 = memref.load %arg4[%c13] : memref<32xf32, #tpu.memory_space<smem>>
      %c15 = arith.constant 15 : index
      %32 = memref.load %arg4[%c15] : memref<32xf32, #tpu.memory_space<smem>>
      %c17 = arith.constant 17 : index
      %33 = memref.load %arg4[%c17] : memref<32xf32, #tpu.memory_space<smem>>
      %c19 = arith.constant 19 : index
      %34 = memref.load %arg4[%c19] : memref<32xf32, #tpu.memory_space<smem>>
      %c21 = arith.constant 21 : index
      %35 = memref.load %arg4[%c21] : memref<32xf32, #tpu.memory_space<smem>>
      %c23 = arith.constant 23 : index
      %36 = memref.load %arg4[%c23] : memref<32xf32, #tpu.memory_space<smem>>
      %c25 = arith.constant 25 : index
      %37 = memref.load %arg4[%c25] : memref<32xf32, #tpu.memory_space<smem>>
      %c27 = arith.constant 27 : index
      %38 = memref.load %arg4[%c27] : memref<32xf32, #tpu.memory_space<smem>>
      %c29 = arith.constant 29 : index
      %39 = memref.load %arg4[%c29] : memref<32xf32, #tpu.memory_space<smem>>
      %c31 = arith.constant 31 : index
      %40 = memref.load %arg4[%c31] : memref<32xf32, #tpu.memory_space<smem>>
      %c0_4 = arith.constant 0 : index
      %41 = memref.load %arg5[%c0_4] : memref<16xf32, #tpu.memory_space<smem>>
      %c1_5 = arith.constant 1 : index
      %42 = memref.load %arg5[%c1_5] : memref<16xf32, #tpu.memory_space<smem>>
      %c2_6 = arith.constant 2 : index
      %43 = memref.load %arg5[%c2_6] : memref<16xf32, #tpu.memory_space<smem>>
      %c3_7 = arith.constant 3 : index
      %44 = memref.load %arg5[%c3_7] : memref<16xf32, #tpu.memory_space<smem>>
      %c4_8 = arith.constant 4 : index
      %45 = memref.load %arg5[%c4_8] : memref<16xf32, #tpu.memory_space<smem>>
      %c5_9 = arith.constant 5 : index
      %46 = memref.load %arg5[%c5_9] : memref<16xf32, #tpu.memory_space<smem>>
      %c6_10 = arith.constant 6 : index
      %47 = memref.load %arg5[%c6_10] : memref<16xf32, #tpu.memory_space<smem>>
      %c7_11 = arith.constant 7 : index
      %48 = memref.load %arg5[%c7_11] : memref<16xf32, #tpu.memory_space<smem>>
      %c8_12 = arith.constant 8 : index
      %49 = memref.load %arg5[%c8_12] : memref<16xf32, #tpu.memory_space<smem>>
      %c9_13 = arith.constant 9 : index
      %50 = memref.load %arg5[%c9_13] : memref<16xf32, #tpu.memory_space<smem>>
      %c10_14 = arith.constant 10 : index
      %51 = memref.load %arg5[%c10_14] : memref<16xf32, #tpu.memory_space<smem>>
      %c11_15 = arith.constant 11 : index
      %52 = memref.load %arg5[%c11_15] : memref<16xf32, #tpu.memory_space<smem>>
      %c12_16 = arith.constant 12 : index
      %53 = memref.load %arg5[%c12_16] : memref<16xf32, #tpu.memory_space<smem>>
      %c13_17 = arith.constant 13 : index
      %54 = memref.load %arg5[%c13_17] : memref<16xf32, #tpu.memory_space<smem>>
      %c14_18 = arith.constant 14 : index
      %55 = memref.load %arg5[%c14_18] : memref<16xf32, #tpu.memory_space<smem>>
      %c15_19 = arith.constant 15 : index
      %56 = memref.load %arg5[%c15_19] : memref<16xf32, #tpu.memory_space<smem>>
      %c0_20 = arith.constant 0 : index
      %57 = memref.load %arg6[%c0_20] : memref<16xf32, #tpu.memory_space<smem>>
      %c1_21 = arith.constant 1 : index
      %58 = memref.load %arg6[%c1_21] : memref<16xf32, #tpu.memory_space<smem>>
      %c2_22 = arith.constant 2 : index
      %59 = memref.load %arg6[%c2_22] : memref<16xf32, #tpu.memory_space<smem>>
      %c3_23 = arith.constant 3 : index
      %60 = memref.load %arg6[%c3_23] : memref<16xf32, #tpu.memory_space<smem>>
      %c4_24 = arith.constant 4 : index
      %61 = memref.load %arg6[%c4_24] : memref<16xf32, #tpu.memory_space<smem>>
      %c5_25 = arith.constant 5 : index
      %62 = memref.load %arg6[%c5_25] : memref<16xf32, #tpu.memory_space<smem>>
      %c6_26 = arith.constant 6 : index
      %63 = memref.load %arg6[%c6_26] : memref<16xf32, #tpu.memory_space<smem>>
      %c7_27 = arith.constant 7 : index
      %64 = memref.load %arg6[%c7_27] : memref<16xf32, #tpu.memory_space<smem>>
      %c8_28 = arith.constant 8 : index
      %65 = memref.load %arg6[%c8_28] : memref<16xf32, #tpu.memory_space<smem>>
      %c9_29 = arith.constant 9 : index
      %66 = memref.load %arg6[%c9_29] : memref<16xf32, #tpu.memory_space<smem>>
      %c10_30 = arith.constant 10 : index
      %67 = memref.load %arg6[%c10_30] : memref<16xf32, #tpu.memory_space<smem>>
      %c11_31 = arith.constant 11 : index
      %68 = memref.load %arg6[%c11_31] : memref<16xf32, #tpu.memory_space<smem>>
      %c12_32 = arith.constant 12 : index
      %69 = memref.load %arg6[%c12_32] : memref<16xf32, #tpu.memory_space<smem>>
      %c13_33 = arith.constant 13 : index
      %70 = memref.load %arg6[%c13_33] : memref<16xf32, #tpu.memory_space<smem>>
      %c14_34 = arith.constant 14 : index
      %71 = memref.load %arg6[%c14_34] : memref<16xf32, #tpu.memory_space<smem>>
      %c15_35 = arith.constant 15 : index
      %72 = memref.load %arg6[%c15_35] : memref<16xf32, #tpu.memory_space<smem>>
      %c0_36 = arith.constant 0 : index
      %73 = memref.load %arg7[%c0_36] : memref<1xf32, #tpu.memory_space<smem>>
      %cst = arith.constant 0.000000e+00 : f32
      %74 = arith.subf %cst, %73 : f32
      %c0_37 = arith.constant 0 : index
      %c0_38 = arith.constant 0 : index
      %c0_39 = arith.constant 0 : index
      %c0_40 = arith.constant 0 : index
      %75 = vector.load %arg12[%c0_37, %c0_38, %c0_39, %c0_40] : memref<1x1x8x128xf32, #tpu.memory_space<vmem>>, vector<1x1x8x128xf32>
      %76 = vector.shape_cast %75 : vector<1x1x8x128xf32> to vector<8x128xf32>
      %cst_41 = arith.constant 0.000000e+00 : f32
      %77 = vector.broadcast %cst_41 : f32 to vector<8x128xf32>
      %c0_i32_42 = arith.constant 0 : i32
      %c8_i32 = arith.constant 8 : i32
      %78 = arith.muli %c0_i32_42, %c8_i32 : i32
      %79 = tpu.assume_multiple %78, 8 : i32
      %c0_43 = arith.constant 0 : index
      %c0_44 = arith.constant 0 : index
      %80 = arith.index_cast %79 : i32 to index
      %c0_45 = arith.constant 0 : index
      %81 = vector.load %arg3[%c0_43, %c0_44, %80, %c0_45] : memref<1x1x8x128xf32, #tpu.memory_space<vmem>>, vector<1x1x8x128xf32>
      %82 = vector.shape_cast %81 : vector<1x1x8x128xf32> to vector<8x128xf32>
      %cst_46 = arith.constant 1.000000e-30 : f32
      %83 = vector.broadcast %cst_46 : f32 to vector<8x128xf32>
      %84 = arith.addf %82, %83 : vector<8x128xf32>
      %85 = math.log %84 : vector<8x128xf32>
      %86 = arith.mulf %82, %85 : vector<8x128xf32>
      %cst_47 = arith.constant 1.000000e+00 : f32
      %87 = vector.broadcast %cst_47 : f32 to vector<8x128xf32>
      %88 = arith.subf %87, %82 : vector<8x128xf32>
      %cst_48 = arith.constant 1.000000e-30 : f32
      %89 = vector.broadcast %cst_48 : f32 to vector<8x128xf32>
      %90 = arith.addf %88, %89 : vector<8x128xf32>
      %91 = math.log %90 : vector<8x128xf32>
      %92 = arith.mulf %88, %91 : vector<8x128xf32>
      %93 = vector.broadcast %9 : f32 to vector<8x128xf32>
      %94 = arith.mulf %93, %86 : vector<8x128xf32>
      %95 = vector.broadcast %25 : f32 to vector<8x128xf32>
      %96 = arith.mulf %95, %92 : vector<8x128xf32>
      %97 = arith.addf %94, %96 : vector<8x128xf32>
      %98 = vector.broadcast %41 : f32 to vector<8x128xf32>
      %99 = arith.addf %97, %98 : vector<8x128xf32>
      %cst_49 = arith.constant 2.000000e-01 : f32
      %100 = vector.broadcast %cst_49 : f32 to vector<8x128xf32>
      %101 = arith.mulf %100, %99 : vector<8x128xf32>
      %102 = arith.maximumf %99, %101 : vector<8x128xf32>
      %103 = vector.broadcast %57 : f32 to vector<8x128xf32>
      %104 = arith.mulf %103, %102 : vector<8x128xf32>
      %105 = vector.broadcast %10 : f32 to vector<8x128xf32>
      %106 = arith.mulf %105, %86 : vector<8x128xf32>
      %107 = vector.broadcast %26 : f32 to vector<8x128xf32>
      %108 = arith.mulf %107, %92 : vector<8x128xf32>
      %109 = arith.addf %106, %108 : vector<8x128xf32>
      %110 = vector.broadcast %42 : f32 to vector<8x128xf32>
      %111 = arith.addf %109, %110 : vector<8x128xf32>
      %cst_50 = arith.constant 2.000000e-01 : f32
      %112 = vector.broadcast %cst_50 : f32 to vector<8x128xf32>
      %113 = arith.mulf %112, %111 : vector<8x128xf32>
      %114 = arith.maximumf %111, %113 : vector<8x128xf32>
      %115 = vector.broadcast %58 : f32 to vector<8x128xf32>
      %116 = arith.mulf %115, %114 : vector<8x128xf32>
      %117 = arith.addf %104, %116 : vector<8x128xf32>
      %118 = vector.broadcast %11 : f32 to vector<8x128xf32>
      %119 = arith.mulf %118, %86 : vector<8x128xf32>
      %120 = vector.broadcast %27 : f32 to vector<8x128xf32>
      %121 = arith.mulf %120, %92 : vector<8x128xf32>
      %122 = arith.addf %119, %121 : vector<8x128xf32>
      %123 = vector.broadcast %43 : f32 to vector<8x128xf32>
      %124 = arith.addf %122, %123 : vector<8x128xf32>
      %cst_51 = arith.constant 2.000000e-01 : f32
      %125 = vector.broadcast %cst_51 : f32 to vector<8x128xf32>
      %126 = arith.mulf %125, %124 : vector<8x128xf32>
      %127 = arith.maximumf %124, %126 : vector<8x128xf32>
      %128 = vector.broadcast %59 : f32 to vector<8x128xf32>
      %129 = arith.mulf %128, %127 : vector<8x128xf32>
      %130 = arith.addf %117, %129 : vector<8x128xf32>
      %131 = vector.broadcast %12 : f32 to vector<8x128xf32>
      %132 = arith.mulf %131, %86 : vector<8x128xf32>
      %133 = vector.broadcast %28 : f32 to vector<8x128xf32>
      %134 = arith.mulf %133, %92 : vector<8x128xf32>
      %135 = arith.addf %132, %134 : vector<8x128xf32>
      %136 = vector.broadcast %44 : f32 to vector<8x128xf32>
      %137 = arith.addf %135, %136 : vector<8x128xf32>
      %cst_52 = arith.constant 2.000000e-01 : f32
      %138 = vector.broadcast %cst_52 : f32 to vector<8x128xf32>
      %139 = arith.mulf %138, %137 : vector<8x128xf32>
      %140 = arith.maximumf %137, %139 : vector<8x128xf32>
      %141 = vector.broadcast %60 : f32 to vector<8x128xf32>
      %142 = arith.mulf %141, %140 : vector<8x128xf32>
      %143 = arith.addf %130, %142 : vector<8x128xf32>
      %144 = vector.broadcast %13 : f32 to vector<8x128xf32>
      %145 = arith.mulf %144, %86 : vector<8x128xf32>
      %146 = vector.broadcast %29 : f32 to vector<8x128xf32>
      %147 = arith.mulf %146, %92 : vector<8x128xf32>
      %148 = arith.addf %145, %147 : vector<8x128xf32>
      %149 = vector.broadcast %45 : f32 to vector<8x128xf32>
      %150 = arith.addf %148, %149 : vector<8x128xf32>
      %cst_53 = arith.constant 2.000000e-01 : f32
      %151 = vector.broadcast %cst_53 : f32 to vector<8x128xf32>
      %152 = arith.mulf %151, %150 : vector<8x128xf32>
      %153 = arith.maximumf %150, %152 : vector<8x128xf32>
      %154 = vector.broadcast %61 : f32 to vector<8x128xf32>
      %155 = arith.mulf %154, %153 : vector<8x128xf32>
      %156 = arith.addf %143, %155 : vector<8x128xf32>
      %157 = vector.broadcast %14 : f32 to vector<8x128xf32>
      %158 = arith.mulf %157, %86 : vector<8x128xf32>
      %159 = vector.broadcast %30 : f32 to vector<8x128xf32>
      %160 = arith.mulf %159, %92 : vector<8x128xf32>
      %161 = arith.addf %158, %160 : vector<8x128xf32>
      %162 = vector.broadcast %46 : f32 to vector<8x128xf32>
      %163 = arith.addf %161, %162 : vector<8x128xf32>
      %cst_54 = arith.constant 2.000000e-01 : f32
      %164 = vector.broadcast %cst_54 : f32 to vector<8x128xf32>
      %165 = arith.mulf %164, %163 : vector<8x128xf32>
      %166 = arith.maximumf %163, %165 : vector<8x128xf32>
      %167 = vector.broadcast %62 : f32 to vector<8x128xf32>
      %168 = arith.mulf %167, %166 : vector<8x128xf32>
      %169 = arith.addf %156, %168 : vector<8x128xf32>
      %170 = vector.broadcast %15 : f32 to vector<8x128xf32>
      %171 = arith.mulf %170, %86 : vector<8x128xf32>
      %172 = vector.broadcast %31 : f32 to vector<8x128xf32>
      %173 = arith.mulf %172, %92 : vector<8x128xf32>
      %174 = arith.addf %171, %173 : vector<8x128xf32>
      %175 = vector.broadcast %47 : f32 to vector<8x128xf32>
      %176 = arith.addf %174, %175 : vector<8x128xf32>
      %cst_55 = arith.constant 2.000000e-01 : f32
      %177 = vector.broadcast %cst_55 : f32 to vector<8x128xf32>
      %178 = arith.mulf %177, %176 : vector<8x128xf32>
      %179 = arith.maximumf %176, %178 : vector<8x128xf32>
      %180 = vector.broadcast %63 : f32 to vector<8x128xf32>
      %181 = arith.mulf %180, %179 : vector<8x128xf32>
      %182 = arith.addf %169, %181 : vector<8x128xf32>
      %183 = vector.broadcast %16 : f32 to vector<8x128xf32>
      %184 = arith.mulf %183, %86 : vector<8x128xf32>
      %185 = vector.broadcast %32 : f32 to vector<8x128xf32>
      %186 = arith.mulf %185, %92 : vector<8x128xf32>
      %187 = arith.addf %184, %186 : vector<8x128xf32>
      %188 = vector.broadcast %48 : f32 to vector<8x128xf32>
      %189 = arith.addf %187, %188 : vector<8x128xf32>
      %cst_56 = arith.constant 2.000000e-01 : f32
      %190 = vector.broadcast %cst_56 : f32 to vector<8x128xf32>
      %191 = arith.mulf %190, %189 : vector<8x128xf32>
      %192 = arith.maximumf %189, %191 : vector<8x128xf32>
      %193 = vector.broadcast %64 : f32 to vector<8x128xf32>
      %194 = arith.mulf %193, %192 : vector<8x128xf32>
      %195 = arith.addf %182, %194 : vector<8x128xf32>
      %196 = vector.broadcast %17 : f32 to vector<8x128xf32>
      %197 = arith.mulf %196, %86 : vector<8x128xf32>
      %198 = vector.broadcast %33 : f32 to vector<8x128xf32>
      %199 = arith.mulf %198, %92 : vector<8x128xf32>
      %200 = arith.addf %197, %199 : vector<8x128xf32>
      %201 = vector.broadcast %49 : f32 to vector<8x128xf32>
      %202 = arith.addf %200, %201 : vector<8x128xf32>
      %cst_57 = arith.constant 2.000000e-01 : f32
      %203 = vector.broadcast %cst_57 : f32 to vector<8x128xf32>
      %204 = arith.mulf %203, %202 : vector<8x128xf32>
      %205 = arith.maximumf %202, %204 : vector<8x128xf32>
      %206 = vector.broadcast %65 : f32 to vector<8x128xf32>
      %207 = arith.mulf %206, %205 : vector<8x128xf32>
      %208 = arith.addf %195, %207 : vector<8x128xf32>
      %209 = vector.broadcast %18 : f32 to vector<8x128xf32>
      %210 = arith.mulf %209, %86 : vector<8x128xf32>
      %211 = vector.broadcast %34 : f32 to vector<8x128xf32>
      %212 = arith.mulf %211, %92 : vector<8x128xf32>
      %213 = arith.addf %210, %212 : vector<8x128xf32>
      %214 = vector.broadcast %50 : f32 to vector<8x128xf32>
      %215 = arith.addf %213, %214 : vector<8x128xf32>
      %cst_58 = arith.constant 2.000000e-01 : f32
      %216 = vector.broadcast %cst_58 : f32 to vector<8x128xf32>
      %217 = arith.mulf %216, %215 : vector<8x128xf32>
      %218 = arith.maximumf %215, %217 : vector<8x128xf32>
      %219 = vector.broadcast %66 : f32 to vector<8x128xf32>
      %220 = arith.mulf %219, %218 : vector<8x128xf32>
      %221 = arith.addf %208, %220 : vector<8x128xf32>
      %222 = vector.broadcast %19 : f32 to vector<8x128xf32>
      %223 = arith.mulf %222, %86 : vector<8x128xf32>
      %224 = vector.broadcast %35 : f32 to vector<8x128xf32>
      %225 = arith.mulf %224, %92 : vector<8x128xf32>
      %226 = arith.addf %223, %225 : vector<8x128xf32>
      %227 = vector.broadcast %51 : f32 to vector<8x128xf32>
      %228 = arith.addf %226, %227 : vector<8x128xf32>
      %cst_59 = arith.constant 2.000000e-01 : f32
      %229 = vector.broadcast %cst_59 : f32 to vector<8x128xf32>
      %230 = arith.mulf %229, %228 : vector<8x128xf32>
      %231 = arith.maximumf %228, %230 : vector<8x128xf32>
      %232 = vector.broadcast %67 : f32 to vector<8x128xf32>
      %233 = arith.mulf %232, %231 : vector<8x128xf32>
      %234 = arith.addf %221, %233 : vector<8x128xf32>
      %235 = vector.broadcast %20 : f32 to vector<8x128xf32>
      %236 = arith.mulf %235, %86 : vector<8x128xf32>
      %237 = vector.broadcast %36 : f32 to vector<8x128xf32>
      %238 = arith.mulf %237, %92 : vector<8x128xf32>
      %239 = arith.addf %236, %238 : vector<8x128xf32>
      %240 = vector.broadcast %52 : f32 to vector<8x128xf32>
      %241 = arith.addf %239, %240 : vector<8x128xf32>
      %cst_60 = arith.constant 2.000000e-01 : f32
      %242 = vector.broadcast %cst_60 : f32 to vector<8x128xf32>
      %243 = arith.mulf %242, %241 : vector<8x128xf32>
      %244 = arith.maximumf %241, %243 : vector<8x128xf32>
      %245 = vector.broadcast %68 : f32 to vector<8x128xf32>
      %246 = arith.mulf %245, %244 : vector<8x128xf32>
      %247 = arith.addf %234, %246 : vector<8x128xf32>
      %248 = vector.broadcast %21 : f32 to vector<8x128xf32>
      %249 = arith.mulf %248, %86 : vector<8x128xf32>
      %250 = vector.broadcast %37 : f32 to vector<8x128xf32>
      %251 = arith.mulf %250, %92 : vector<8x128xf32>
      %252 = arith.addf %249, %251 : vector<8x128xf32>
      %253 = vector.broadcast %53 : f32 to vector<8x128xf32>
      %254 = arith.addf %252, %253 : vector<8x128xf32>
      %cst_61 = arith.constant 2.000000e-01 : f32
      %255 = vector.broadcast %cst_61 : f32 to vector<8x128xf32>
      %256 = arith.mulf %255, %254 : vector<8x128xf32>
      %257 = arith.maximumf %254, %256 : vector<8x128xf32>
      %258 = vector.broadcast %69 : f32 to vector<8x128xf32>
      %259 = arith.mulf %258, %257 : vector<8x128xf32>
      %260 = arith.addf %247, %259 : vector<8x128xf32>
      %261 = vector.broadcast %22 : f32 to vector<8x128xf32>
      %262 = arith.mulf %261, %86 : vector<8x128xf32>
      %263 = vector.broadcast %38 : f32 to vector<8x128xf32>
      %264 = arith.mulf %263, %92 : vector<8x128xf32>
      %265 = arith.addf %262, %264 : vector<8x128xf32>
      %266 = vector.broadcast %54 : f32 to vector<8x128xf32>
      %267 = arith.addf %265, %266 : vector<8x128xf32>
      %cst_62 = arith.constant 2.000000e-01 : f32
      %268 = vector.broadcast %cst_62 : f32 to vector<8x128xf32>
      %269 = arith.mulf %268, %267 : vector<8x128xf32>
      %270 = arith.maximumf %267, %269 : vector<8x128xf32>
      %271 = vector.broadcast %70 : f32 to vector<8x128xf32>
      %272 = arith.mulf %271, %270 : vector<8x128xf32>
      %273 = arith.addf %260, %272 : vector<8x128xf32>
      %274 = vector.broadcast %23 : f32 to vector<8x128xf32>
      %275 = arith.mulf %274, %86 : vector<8x128xf32>
      %276 = vector.broadcast %39 : f32 to vector<8x128xf32>
      %277 = arith.mulf %276, %92 : vector<8x128xf32>
      %278 = arith.addf %275, %277 : vector<8x128xf32>
      %279 = vector.broadcast %55 : f32 to vector<8x128xf32>
      %280 = arith.addf %278, %279 : vector<8x128xf32>
      %cst_63 = arith.constant 2.000000e-01 : f32
      %281 = vector.broadcast %cst_63 : f32 to vector<8x128xf32>
      %282 = arith.mulf %281, %280 : vector<8x128xf32>
      %283 = arith.maximumf %280, %282 : vector<8x128xf32>
      %284 = vector.broadcast %71 : f32 to vector<8x128xf32>
      %285 = arith.mulf %284, %283 : vector<8x128xf32>
      %286 = arith.addf %273, %285 : vector<8x128xf32>
      %287 = vector.broadcast %24 : f32 to vector<8x128xf32>
      %288 = arith.mulf %287, %86 : vector<8x128xf32>
      %289 = vector.broadcast %40 : f32 to vector<8x128xf32>
      %290 = arith.mulf %289, %92 : vector<8x128xf32>
      %291 = arith.addf %288, %290 : vector<8x128xf32>
      %292 = vector.broadcast %56 : f32 to vector<8x128xf32>
      %293 = arith.addf %291, %292 : vector<8x128xf32>
      %cst_64 = arith.constant 2.000000e-01 : f32
      %294 = vector.broadcast %cst_64 : f32 to vector<8x128xf32>
      %295 = arith.mulf %294, %293 : vector<8x128xf32>
      %296 = arith.maximumf %293, %295 : vector<8x128xf32>
      %297 = vector.broadcast %72 : f32 to vector<8x128xf32>
      %298 = arith.mulf %297, %296 : vector<8x128xf32>
      %299 = arith.addf %286, %298 : vector<8x128xf32>
      %300 = vector.broadcast %74 : f32 to vector<8x128xf32>
      %301 = arith.subf %300, %299 : vector<8x128xf32>
      %cst_65 = arith.constant 0.000000e+00 : f32
      %302 = vector.broadcast %cst_65 : f32 to vector<8x128xf32>
      %303 = arith.maximumf %301, %302 : vector<8x128xf32>
      %304 = math.absf %301 : vector<8x128xf32>
      %cst_66 = arith.constant 0.000000e+00 : f32
      %305 = vector.broadcast %cst_66 : f32 to vector<8x128xf32>
      %306 = arith.subf %305, %304 : vector<8x128xf32>
      %307 = math.exp %306 : vector<8x128xf32>
      %cst_67 = arith.constant 1.000000e+00 : f32
      %308 = vector.broadcast %cst_67 : f32 to vector<8x128xf32>
      %309 = arith.addf %308, %307 : vector<8x128xf32>
      %310 = math.log %309 : vector<8x128xf32>
      %311 = arith.addf %303, %310 : vector<8x128xf32>
      %312 = arith.addf %77, %311 : vector<8x128xf32>
      %c1_i32_68 = arith.constant 1 : i32
      %313 = arith.addf %76, %312 : vector<8x128xf32>
      %c0_69 = arith.constant 0 : index
      %c0_70 = arith.constant 0 : index
      %c0_71 = arith.constant 0 : index
      %c0_72 = arith.constant 0 : index
      %314 = vector.load %arg12[%c0_69, %c0_70, %c0_71, %c0_72] : memref<1x1x8x128xf32, #tpu.memory_space<vmem>>, vector<1x1x8x128xf32>
      %315 = vector.shape_cast %314 : vector<1x1x8x128xf32> to vector<8x128xf32>
      %316 = vector.shape_cast %313 : vector<8x128xf32> to vector<1x1x8x128xf32>
      tpu.vector_store %arg12[%c0_69, %c0_70, %c0_71, %c0_72], %316 {strides = array<i32>} : memref<1x1x8x128xf32, #tpu.memory_space<vmem>>, vector<1x1x8x128xf32>,
    } else {
    }
    %c1_i32 = arith.constant 1 : i32
    %6 = arith.cmpi eq, %arg0, %c1_i32 : i32
    %7 = arith.extui %6 : i1 to i32
    %c0_i32_3 = arith.constant 0 : i32
    %8 = arith.cmpi ne, %7, %c0_i32_3 : i32
    scf.if %8 {
      %c0 = arith.constant 0 : index
      %9 = memref.load %arg8[%c0] : memref<16xf32, #tpu.memory_space<smem>>
      %c1 = arith.constant 1 : index
      %10 = memref.load %arg8[%c1] : memref<16xf32, #tpu.memory_space<smem>>
      %c2 = arith.constant 2 : index
      %11 = memref.load %arg8[%c2] : memref<16xf32, #tpu.memory_space<smem>>
      %c3 = arith.constant 3 : index
      %12 = memref.load %arg8[%c3] : memref<16xf32, #tpu.memory_space<smem>>
      %c4 = arith.constant 4 : index
      %13 = memref.load %arg8[%c4] : memref<16xf32, #tpu.memory_space<smem>>
      %c5 = arith.constant 5 : index
      %14 = memref.load %arg8[%c5] : memref<16xf32, #tpu.memory_space<smem>>
      %c6 = arith.constant 6 : index
      %15 = memref.load %arg8[%c6] : memref<16xf32, #tpu.memory_space<smem>>
      %c7 = arith.constant 7 : index
      %16 = memref.load %arg8[%c7] : memref<16xf32, #tpu.memory_space<smem>>
      %c8 = arith.constant 8 : index
      %17 = memref.load %arg8[%c8] : memref<16xf32, #tpu.memory_space<smem>>
      %c9 = arith.constant 9 : index
      %18 = memref.load %arg8[%c9] : memref<16xf32, #tpu.memory_space<smem>>
      %c10 = arith.constant 10 : index
      %19 = memref.load %arg8[%c10] : memref<16xf32, #tpu.memory_space<smem>>
      %c11 = arith.constant 11 : index
      %20 = memref.load %arg8[%c11] : memref<16xf32, #tpu.memory_space<smem>>
      %c12 = arith.constant 12 : index
      %21 = memref.load %arg8[%c12] : memref<16xf32, #tpu.memory_space<smem>>
      %c13 = arith.constant 13 : index
      %22 = memref.load %arg8[%c13] : memref<16xf32, #tpu.memory_space<smem>>
      %c14 = arith.constant 14 : index
      %23 = memref.load %arg8[%c14] : memref<16xf32, #tpu.memory_space<smem>>
      %c15 = arith.constant 15 : index
      %24 = memref.load %arg8[%c15] : memref<16xf32, #tpu.memory_space<smem>>
      %c0_4 = arith.constant 0 : index
      %25 = memref.load %arg9[%c0_4] : memref<16xf32, #tpu.memory_space<smem>>
      %c1_5 = arith.constant 1 : index
      %26 = memref.load %arg9[%c1_5] : memref<16xf32, #tpu.memory_space<smem>>
      %c2_6 = arith.constant 2 : index
      %27 = memref.load %arg9[%c2_6] : memref<16xf32, #tpu.memory_space<smem>>
      %c3_7 = arith.constant 3 : index
      %28 = memref.load %arg9[%c3_7] : memref<16xf32, #tpu.memory_space<smem>>
      %c4_8 = arith.constant 4 : index
      %29 = memref.load %arg9[%c4_8] : memref<16xf32, #tpu.memory_space<smem>>
      %c5_9 = arith.constant 5 : index
      %30 = memref.load %arg9[%c5_9] : memref<16xf32, #tpu.memory_space<smem>>
      %c6_10 = arith.constant 6 : index
      %31 = memref.load %arg9[%c6_10] : memref<16xf32, #tpu.memory_space<smem>>
      %c7_11 = arith.constant 7 : index
      %32 = memref.load %arg9[%c7_11] : memref<16xf32, #tpu.memory_space<smem>>
      %c8_12 = arith.constant 8 : index
      %33 = memref.load %arg9[%c8_12] : memref<16xf32, #tpu.memory_space<smem>>
      %c9_13 = arith.constant 9 : index
      %34 = memref.load %arg9[%c9_13] : memref<16xf32, #tpu.memory_space<smem>>
      %c10_14 = arith.constant 10 : index
      %35 = memref.load %arg9[%c10_14] : memref<16xf32, #tpu.memory_space<smem>>
      %c11_15 = arith.constant 11 : index
      %36 = memref.load %arg9[%c11_15] : memref<16xf32, #tpu.memory_space<smem>>
      %c12_16 = arith.constant 12 : index
      %37 = memref.load %arg9[%c12_16] : memref<16xf32, #tpu.memory_space<smem>>
      %c13_17 = arith.constant 13 : index
      %38 = memref.load %arg9[%c13_17] : memref<16xf32, #tpu.memory_space<smem>>
      %c14_18 = arith.constant 14 : index
      %39 = memref.load %arg9[%c14_18] : memref<16xf32, #tpu.memory_space<smem>>
      %c15_19 = arith.constant 15 : index
      %40 = memref.load %arg9[%c15_19] : memref<16xf32, #tpu.memory_space<smem>>
      %c0_20 = arith.constant 0 : index
      %41 = memref.load %arg10[%c0_20] : memref<16xf32, #tpu.memory_space<smem>>
      %c1_21 = arith.constant 1 : index
      %42 = memref.load %arg10[%c1_21] : memref<16xf32, #tpu.memory_space<smem>>
      %c2_22 = arith.constant 2 : index
      %43 = memref.load %arg10[%c2_22] : memref<16xf32, #tpu.memory_space<smem>>
      %c3_23 = arith.constant 3 : index
      %44 = memref.load %arg10[%c3_23] : memref<16xf32, #tpu.memory_space<smem>>
      %c4_24 = arith.constant 4 : index
      %45 = memref.load %arg10[%c4_24] : memref<16xf32, #tpu.memory_space<smem>>
      %c5_25 = arith.constant 5 : index
      %46 = memref.load %arg10[%c5_25] : memref<16xf32, #tpu.memory_space<smem>>
      %c6_26 = arith.constant 6 : index
      %47 = memref.load %arg10[%c6_26] : memref<16xf32, #tpu.memory_space<smem>>
      %c7_27 = arith.constant 7 : index
      %48 = memref.load %arg10[%c7_27] : memref<16xf32, #tpu.memory_space<smem>>
      %c8_28 = arith.constant 8 : index
      %49 = memref.load %arg10[%c8_28] : memref<16xf32, #tpu.memory_space<smem>>
      %c9_29 = arith.constant 9 : index
      %50 = memref.load %arg10[%c9_29] : memref<16xf32, #tpu.memory_space<smem>>
      %c10_30 = arith.constant 10 : index
      %51 = memref.load %arg10[%c10_30] : memref<16xf32, #tpu.memory_space<smem>>
      %c11_31 = arith.constant 11 : index
      %52 = memref.load %arg10[%c11_31] : memref<16xf32, #tpu.memory_space<smem>>
      %c12_32 = arith.constant 12 : index
      %53 = memref.load %arg10[%c12_32] : memref<16xf32, #tpu.memory_space<smem>>
      %c13_33 = arith.constant 13 : index
      %54 = memref.load %arg10[%c13_33] : memref<16xf32, #tpu.memory_space<smem>>
      %c14_34 = arith.constant 14 : index
      %55 = memref.load %arg10[%c14_34] : memref<16xf32, #tpu.memory_space<smem>>
      %c15_35 = arith.constant 15 : index
      %56 = memref.load %arg10[%c15_35] : memref<16xf32, #tpu.memory_space<smem>>
      %c0_36 = arith.constant 0 : index
      %57 = memref.load %arg11[%c0_36] : memref<1xf32, #tpu.memory_space<smem>>
      %cst = arith.constant 0.000000e+00 : f32
      %58 = arith.subf %cst, %57 : f32
      %c0_37 = arith.constant 0 : index
      %c0_38 = arith.constant 0 : index
      %c0_39 = arith.constant 0 : index
      %c0_40 = arith.constant 0 : index
      %59 = vector.load %arg12[%c0_37, %c0_38, %c0_39, %c0_40] : memref<1x1x8x128xf32, #tpu.memory_space<vmem>>, vector<1x1x8x128xf32>
      %60 = vector.shape_cast %59 : vector<1x1x8x128xf32> to vector<8x128xf32>
      %cst_41 = arith.constant 0.000000e+00 : f32
      %61 = vector.broadcast %cst_41 : f32 to vector<8x128xf32>
      %c0_i32_42 = arith.constant 0 : i32
      %c8_i32 = arith.constant 8 : i32
      %62 = arith.muli %c0_i32_42, %c8_i32 : i32
      %63 = tpu.assume_multiple %62, 8 : i32
      %c0_43 = arith.constant 0 : index
      %c0_44 = arith.constant 0 : index
      %64 = arith.index_cast %63 : i32 to index
      %c0_45 = arith.constant 0 : index
      %65 = vector.load %arg3[%c0_43, %c0_44, %64, %c0_45] : memref<1x1x8x128xf32, #tpu.memory_space<vmem>>, vector<1x1x8x128xf32>
      %66 = vector.shape_cast %65 : vector<1x1x8x128xf32> to vector<8x128xf32>
      %67 = vector.broadcast %9 : f32 to vector<8x128xf32>
      %68 = arith.mulf %67, %66 : vector<8x128xf32>
      %69 = vector.broadcast %25 : f32 to vector<8x128xf32>
      %70 = arith.addf %68, %69 : vector<8x128xf32>
      %cst_46 = arith.constant 2.000000e-01 : f32
      %71 = vector.broadcast %cst_46 : f32 to vector<8x128xf32>
      %72 = arith.mulf %71, %70 : vector<8x128xf32>
      %73 = arith.maximumf %70, %72 : vector<8x128xf32>
      %74 = vector.broadcast %41 : f32 to vector<8x128xf32>
      %75 = arith.mulf %74, %73 : vector<8x128xf32>
      %76 = vector.broadcast %10 : f32 to vector<8x128xf32>
      %77 = arith.mulf %76, %66 : vector<8x128xf32>
      %78 = vector.broadcast %26 : f32 to vector<8x128xf32>
      %79 = arith.addf %77, %78 : vector<8x128xf32>
      %cst_47 = arith.constant 2.000000e-01 : f32
      %80 = vector.broadcast %cst_47 : f32 to vector<8x128xf32>
      %81 = arith.mulf %80, %79 : vector<8x128xf32>
      %82 = arith.maximumf %79, %81 : vector<8x128xf32>
      %83 = vector.broadcast %42 : f32 to vector<8x128xf32>
      %84 = arith.mulf %83, %82 : vector<8x128xf32>
      %85 = arith.addf %75, %84 : vector<8x128xf32>
      %86 = vector.broadcast %11 : f32 to vector<8x128xf32>
      %87 = arith.mulf %86, %66 : vector<8x128xf32>
      %88 = vector.broadcast %27 : f32 to vector<8x128xf32>
      %89 = arith.addf %87, %88 : vector<8x128xf32>
      %cst_48 = arith.constant 2.000000e-01 : f32
      %90 = vector.broadcast %cst_48 : f32 to vector<8x128xf32>
      %91 = arith.mulf %90, %89 : vector<8x128xf32>
      %92 = arith.maximumf %89, %91 : vector<8x128xf32>
      %93 = vector.broadcast %43 : f32 to vector<8x128xf32>
      %94 = arith.mulf %93, %92 : vector<8x128xf32>
      %95 = arith.addf %85, %94 : vector<8x128xf32>
      %96 = vector.broadcast %12 : f32 to vector<8x128xf32>
      %97 = arith.mulf %96, %66 : vector<8x128xf32>
      %98 = vector.broadcast %28 : f32 to vector<8x128xf32>
      %99 = arith.addf %97, %98 : vector<8x128xf32>
      %cst_49 = arith.constant 2.000000e-01 : f32
      %100 = vector.broadcast %cst_49 : f32 to vector<8x128xf32>
      %101 = arith.mulf %100, %99 : vector<8x128xf32>
      %102 = arith.maximumf %99, %101 : vector<8x128xf32>
      %103 = vector.broadcast %44 : f32 to vector<8x128xf32>
      %104 = arith.mulf %103, %102 : vector<8x128xf32>
      %105 = arith.addf %95, %104 : vector<8x128xf32>
      %106 = vector.broadcast %13 : f32 to vector<8x128xf32>
      %107 = arith.mulf %106, %66 : vector<8x128xf32>
      %108 = vector.broadcast %29 : f32 to vector<8x128xf32>
      %109 = arith.addf %107, %108 : vector<8x128xf32>
      %cst_50 = arith.constant 2.000000e-01 : f32
      %110 = vector.broadcast %cst_50 : f32 to vector<8x128xf32>
      %111 = arith.mulf %110, %109 : vector<8x128xf32>
      %112 = arith.maximumf %109, %111 : vector<8x128xf32>
      %113 = vector.broadcast %45 : f32 to vector<8x128xf32>
      %114 = arith.mulf %113, %112 : vector<8x128xf32>
      %115 = arith.addf %105, %114 : vector<8x128xf32>
      %116 = vector.broadcast %14 : f32 to vector<8x128xf32>
      %117 = arith.mulf %116, %66 : vector<8x128xf32>
      %118 = vector.broadcast %30 : f32 to vector<8x128xf32>
      %119 = arith.addf %117, %118 : vector<8x128xf32>
      %cst_51 = arith.constant 2.000000e-01 : f32
      %120 = vector.broadcast %cst_51 : f32 to vector<8x128xf32>
      %121 = arith.mulf %120, %119 : vector<8x128xf32>
      %122 = arith.maximumf %119, %121 : vector<8x128xf32>
      %123 = vector.broadcast %46 : f32 to vector<8x128xf32>
      %124 = arith.mulf %123, %122 : vector<8x128xf32>
      %125 = arith.addf %115, %124 : vector<8x128xf32>
      %126 = vector.broadcast %15 : f32 to vector<8x128xf32>
      %127 = arith.mulf %126, %66 : vector<8x128xf32>
      %128 = vector.broadcast %31 : f32 to vector<8x128xf32>
      %129 = arith.addf %127, %128 : vector<8x128xf32>
      %cst_52 = arith.constant 2.000000e-01 : f32
      %130 = vector.broadcast %cst_52 : f32 to vector<8x128xf32>
      %131 = arith.mulf %130, %129 : vector<8x128xf32>
      %132 = arith.maximumf %129, %131 : vector<8x128xf32>
      %133 = vector.broadcast %47 : f32 to vector<8x128xf32>
      %134 = arith.mulf %133, %132 : vector<8x128xf32>
      %135 = arith.addf %125, %134 : vector<8x128xf32>
      %136 = vector.broadcast %16 : f32 to vector<8x128xf32>
      %137 = arith.mulf %136, %66 : vector<8x128xf32>
      %138 = vector.broadcast %32 : f32 to vector<8x128xf32>
      %139 = arith.addf %137, %138 : vector<8x128xf32>
      %cst_53 = arith.constant 2.000000e-01 : f32
      %140 = vector.broadcast %cst_53 : f32 to vector<8x128xf32>
      %141 = arith.mulf %140, %139 : vector<8x128xf32>
      %142 = arith.maximumf %139, %141 : vector<8x128xf32>
      %143 = vector.broadcast %48 : f32 to vector<8x128xf32>
      %144 = arith.mulf %143, %142 : vector<8x128xf32>
      %145 = arith.addf %135, %144 : vector<8x128xf32>
      %146 = vector.broadcast %17 : f32 to vector<8x128xf32>
      %147 = arith.mulf %146, %66 : vector<8x128xf32>
      %148 = vector.broadcast %33 : f32 to vector<8x128xf32>
      %149 = arith.addf %147, %148 : vector<8x128xf32>
      %cst_54 = arith.constant 2.000000e-01 : f32
      %150 = vector.broadcast %cst_54 : f32 to vector<8x128xf32>
      %151 = arith.mulf %150, %149 : vector<8x128xf32>
      %152 = arith.maximumf %149, %151 : vector<8x128xf32>
      %153 = vector.broadcast %49 : f32 to vector<8x128xf32>
      %154 = arith.mulf %153, %152 : vector<8x128xf32>
      %155 = arith.addf %145, %154 : vector<8x128xf32>
      %156 = vector.broadcast %18 : f32 to vector<8x128xf32>
      %157 = arith.mulf %156, %66 : vector<8x128xf32>
      %158 = vector.broadcast %34 : f32 to vector<8x128xf32>
      %159 = arith.addf %157, %158 : vector<8x128xf32>
      %cst_55 = arith.constant 2.000000e-01 : f32
      %160 = vector.broadcast %cst_55 : f32 to vector<8x128xf32>
      %161 = arith.mulf %160, %159 : vector<8x128xf32>
      %162 = arith.maximumf %159, %161 : vector<8x128xf32>
      %163 = vector.broadcast %50 : f32 to vector<8x128xf32>
      %164 = arith.mulf %163, %162 : vector<8x128xf32>
      %165 = arith.addf %155, %164 : vector<8x128xf32>
      %166 = vector.broadcast %19 : f32 to vector<8x128xf32>
      %167 = arith.mulf %166, %66 : vector<8x128xf32>
      %168 = vector.broadcast %35 : f32 to vector<8x128xf32>
      %169 = arith.addf %167, %168 : vector<8x128xf32>
      %cst_56 = arith.constant 2.000000e-01 : f32
      %170 = vector.broadcast %cst_56 : f32 to vector<8x128xf32>
      %171 = arith.mulf %170, %169 : vector<8x128xf32>
      %172 = arith.maximumf %169, %171 : vector<8x128xf32>
      %173 = vector.broadcast %51 : f32 to vector<8x128xf32>
      %174 = arith.mulf %173, %172 : vector<8x128xf32>
      %175 = arith.addf %165, %174 : vector<8x128xf32>
      %176 = vector.broadcast %20 : f32 to vector<8x128xf32>
      %177 = arith.mulf %176, %66 : vector<8x128xf32>
      %178 = vector.broadcast %36 : f32 to vector<8x128xf32>
      %179 = arith.addf %177, %178 : vector<8x128xf32>
      %cst_57 = arith.constant 2.000000e-01 : f32
      %180 = vector.broadcast %cst_57 : f32 to vector<8x128xf32>
      %181 = arith.mulf %180, %179 : vector<8x128xf32>
      %182 = arith.maximumf %179, %181 : vector<8x128xf32>
      %183 = vector.broadcast %52 : f32 to vector<8x128xf32>
      %184 = arith.mulf %183, %182 : vector<8x128xf32>
      %185 = arith.addf %175, %184 : vector<8x128xf32>
      %186 = vector.broadcast %21 : f32 to vector<8x128xf32>
      %187 = arith.mulf %186, %66 : vector<8x128xf32>
      %188 = vector.broadcast %37 : f32 to vector<8x128xf32>
      %189 = arith.addf %187, %188 : vector<8x128xf32>
      %cst_58 = arith.constant 2.000000e-01 : f32
      %190 = vector.broadcast %cst_58 : f32 to vector<8x128xf32>
      %191 = arith.mulf %190, %189 : vector<8x128xf32>
      %192 = arith.maximumf %189, %191 : vector<8x128xf32>
      %193 = vector.broadcast %53 : f32 to vector<8x128xf32>
      %194 = arith.mulf %193, %192 : vector<8x128xf32>
      %195 = arith.addf %185, %194 : vector<8x128xf32>
      %196 = vector.broadcast %22 : f32 to vector<8x128xf32>
      %197 = arith.mulf %196, %66 : vector<8x128xf32>
      %198 = vector.broadcast %38 : f32 to vector<8x128xf32>
      %199 = arith.addf %197, %198 : vector<8x128xf32>
      %cst_59 = arith.constant 2.000000e-01 : f32
      %200 = vector.broadcast %cst_59 : f32 to vector<8x128xf32>
      %201 = arith.mulf %200, %199 : vector<8x128xf32>
      %202 = arith.maximumf %199, %201 : vector<8x128xf32>
      %203 = vector.broadcast %54 : f32 to vector<8x128xf32>
      %204 = arith.mulf %203, %202 : vector<8x128xf32>
      %205 = arith.addf %195, %204 : vector<8x128xf32>
      %206 = vector.broadcast %23 : f32 to vector<8x128xf32>
      %207 = arith.mulf %206, %66 : vector<8x128xf32>
      %208 = vector.broadcast %39 : f32 to vector<8x128xf32>
      %209 = arith.addf %207, %208 : vector<8x128xf32>
      %cst_60 = arith.constant 2.000000e-01 : f32
      %210 = vector.broadcast %cst_60 : f32 to vector<8x128xf32>
      %211 = arith.mulf %210, %209 : vector<8x128xf32>
      %212 = arith.maximumf %209, %211 : vector<8x128xf32>
      %213 = vector.broadcast %55 : f32 to vector<8x128xf32>
      %214 = arith.mulf %213, %212 : vector<8x128xf32>
      %215 = arith.addf %205, %214 : vector<8x128xf32>
      %216 = vector.broadcast %24 : f32 to vector<8x128xf32>
      %217 = arith.mulf %216, %66 : vector<8x128xf32>
      %218 = vector.broadcast %40 : f32 to vector<8x128xf32>
      %219 = arith.addf %217, %218 : vector<8x128xf32>
      %cst_61 = arith.constant 2.000000e-01 : f32
      %220 = vector.broadcast %cst_61 : f32 to vector<8x128xf32>
      %221 = arith.mulf %220, %219 : vector<8x128xf32>
      %222 = arith.maximumf %219, %221 : vector<8x128xf32>
      %223 = vector.broadcast %56 : f32 to vector<8x128xf32>
      %224 = arith.mulf %223, %222 : vector<8x128xf32>
      %225 = arith.addf %215, %224 : vector<8x128xf32>
      %226 = vector.broadcast %58 : f32 to vector<8x128xf32>
      %227 = arith.subf %226, %225 : vector<8x128xf32>
      %cst_62 = arith.constant 0.000000e+00 : f32
      %228 = vector.broadcast %cst_62 : f32 to vector<8x128xf32>
      %229 = arith.maximumf %227, %228 : vector<8x128xf32>
      %230 = math.absf %227 : vector<8x128xf32>
      %cst_63 = arith.constant 0.000000e+00 : f32
      %231 = vector.broadcast %cst_63 : f32 to vector<8x128xf32>
      %232 = arith.subf %231, %230 : vector<8x128xf32>
      %233 = math.exp %232 : vector<8x128xf32>
      %cst_64 = arith.constant 1.000000e+00 : f32
      %234 = vector.broadcast %cst_64 : f32 to vector<8x128xf32>
      %235 = arith.addf %234, %233 : vector<8x128xf32>
      %236 = math.log %235 : vector<8x128xf32>
      %237 = arith.addf %229, %236 : vector<8x128xf32>
      %238 = arith.addf %61, %237 : vector<8x128xf32>
      %c1_i32_65 = arith.constant 1 : i32
      %239 = arith.addf %60, %238 : vector<8x128xf32>
      %c0_66 = arith.constant 0 : index
      %c0_67 = arith.constant 0 : index
      %c0_68 = arith.constant 0 : index
      %c0_69 = arith.constant 0 : index
      %240 = vector.load %arg12[%c0_66, %c0_67, %c0_68, %c0_69] : memref<1x1x8x128xf32, #tpu.memory_space<vmem>>, vector<1x1x8x128xf32>
      %241 = vector.shape_cast %240 : vector<1x1x8x128xf32> to vector<8x128xf32>
      %242 = vector.shape_cast %239 : vector<8x128xf32> to vector<1x1x8x128xf32>
      tpu.vector_store %arg12[%c0_66, %c0_67, %c0_68, %c0_69], %242 {strides = array<i32>} : memref<1x1x8x128xf32, #tpu.memory_space<vmem>>, vector<1x1x8x128xf32>,
    } else {
    }
    return
  }
  func.func @transform_0(%arg0: i32, %arg1: i32, %arg2: i32) -> (i32, i32, i32, i32) {
    %c0_i32 = arith.constant 0 : i32
    %c0_i32_0 = arith.constant 0 : i32
    return %arg0, %arg1, %arg2, %c0_i32 : i32, i32, i32, i32
  }
  func.func @transform_1(%arg0: i32, %arg1: i32, %arg2: i32) -> i32 {
    %c0_i32 = arith.constant 0 : i32
    %c0_i32_0 = arith.constant 0 : i32
    return %c0_i32 : i32
  }
  func.func @transform_2(%arg0: i32, %arg1: i32, %arg2: i32) -> i32 {
    %c0_i32 = arith.constant 0 : i32
    %c0_i32_0 = arith.constant 0 : i32
    return %c0_i32 : i32
  }
  func.func @transform_3(%arg0: i32, %arg1: i32, %arg2: i32) -> i32 {
    %c0_i32 = arith.constant 0 : i32
    %c0_i32_0 = arith.constant 0 : i32
    return %c0_i32 : i32
  }
  func.func @transform_4(%arg0: i32, %arg1: i32, %arg2: i32) -> i32 {
    %c0_i32 = arith.constant 0 : i32
    %c0_i32_0 = arith.constant 0 : i32
    return %c0_i32 : i32
  }
  func.func @transform_5(%arg0: i32, %arg1: i32, %arg2: i32) -> i32 {
    %c0_i32 = arith.constant 0 : i32
    %c0_i32_0 = arith.constant 0 : i32
    return %c0_i32 : i32
  }
  func.func @transform_6(%arg0: i32, %arg1: i32, %arg2: i32) -> i32 {
    %c0_i32 = arith.constant 0 : i32
    %c0_i32_0 = arith.constant 0 : i32
    return %c0_i32 : i32
  }
  func.func @transform_7(%arg0: i32, %arg1: i32, %arg2: i32) -> i32 {
    %c0_i32 = arith.constant 0 : i32
    %c0_i32_0 = arith.constant 0 : i32
    return %c0_i32 : i32
  }
  func.func @transform_8(%arg0: i32, %arg1: i32, %arg2: i32) -> i32 {
    %c0_i32 = arith.constant 0 : i32
    %c0_i32_0 = arith.constant 0 : i32
    return %c0_i32 : i32
  }
  func.func @transform_9(%arg0: i32, %arg1: i32, %arg2: i32) -> (i32, i32, i32, i32) {
    %c0_i32 = arith.constant 0 : i32
    %c0_i32_0 = arith.constant 0 : i32
    %c0_i32_1 = arith.constant 0 : i32
    return %arg0, %arg1, %c0_i32, %c0_i32_0 : i32, i32, i32, i32
  }
}

</mosaic_0001>

<bundles_post_ra>
// kernel: loss_G_forward.1
= control target key start
LH: loop header
LB: loop body
LE: loop exit
PB: predicated region body
PF: predicated region fallthrough
CT: control target
= control target key end

     0   :  { %s2132_s0 = inlined_call_operand.vmem [shape: f32[2,2,8,128], index: 0, kind: input, shape index: {}]   ;;  %s2133_s1 = inlined_call_operand.vmem [shape: f32[32], index: 1, kind: input, shape index: {}]   ;;  %s2134_s2 = inlined_call_operand.vmem [shape: f32[16], index: 2, kind: input, shape index: {}]   ;;  %s2135_s3 = inlined_call_operand.vmem [shape: f32[16], index: 3, kind: input, shape index: {}]   ;;  %s2136_s4 = inlined_call_operand.<no memory space> [shape: f32[1], index: 4, kind: input, shape index: {}]   ;;  %s2137_s5 = inlined_call_operand.vmem [shape: f32[16], index: 5, kind: input, shape index: {}]   ;;  %s2138_s6 = inlined_call_operand.vmem [shape: f32[16], index: 6, kind: input, shape index: {}]   ;;  %s2139_s7 = inlined_call_operand.vmem [shape: f32[16], index: 7, kind: input, shape index: {}]   ;;  %s2140_s8 = inlined_call_operand.<no memory space> [shape: f32[1], index: 8, kind: input, shape index: {}]   ;;  %s2141_s9 = inlined_call_operand.vmem [shape: f32[2,2,8,128], index: 9, kind: output, shape index: {}]  }
   0x1   :  { %2149 = sst [smem:[#allocation24_spill]] %s2132_s0 }
   0x2   :  { %2150 = sst [smem:[#allocation25_spill]] %s2133_s1 }
   0x3   :  { %2151 = sst [smem:[#allocation26_spill]] %s2134_s2 }
   0x4   :  { %2152 = sst [smem:[#allocation27_spill]] %s2135_s3 }
   0x5   :  { %2153 = sst [smem:[#allocation28_spill]] %s2137_s5 }
   0x6   :  { %2154 = sst [smem:[#allocation29_spill]] %s2138_s6 }
   0x7   :  { %2155 = sst [smem:[#allocation30_spill]] %s2139_s7 }
   0x8   :  { %2156 = sst [smem:[#allocation31_spill]] %s2141_s9 }
   0x9   :  { %14 = sst [smem:[#allocation2]] %s2136_s4 }
   0xa   :  { %15 = sst [smem:[#allocation3]] %s2140_s8 }
   0xb   :  { %16 = vsyncpa [#allocation5], 0 }
   0xc   :  { %17 = vsyncpa [#allocation7], 0 }
   0xd   :  { %18 = vsyncpa [#allocation10], 0 }
   0xe   :  { %19 = vsyncpa [#allocation13], 0  ;;  %s1572_s13 = smov 0   ;;  %s1574_s14 = smov 0  }
   0xf   :  { %s1576_s15 = smov 0   ;;  %s1578_s16 = smov 0  }
  0x10   :  { %s1580_s17 = smov 0  }
  0x11 LB: > { %2157 = sst [smem:[#allocation18_spill]] %s1499_s15  ;;  %s1118_s19 = sadd.s32 4294967295, %s1507_s17   ;;  %s1507_s17 = sphi %s1580_s17, %s25_s17   ;;  %s1503_s16 = sphi %s1578_s16, %s2182_s16   ;;  %s1499_s15 = sphi %s1576_s15, %s2181_s15   ;;  %s1495_s14 = sphi %s1574_s14, %s2180_s14   ;;  %s1491_s13 = sphi %s1572_s13, %s2179_s13  }
  0x12   : > { %2158 = sst [smem:[#allocation19_spill]] %s1503_s16  ;;  %p1120_p0 = scmp.ge.s32.totalorder %s1507_s17, 1 }
  0x13   : > { %2159 = sst [smem:[#allocation20_spill]] %s1507_s17  ;;  %p275_p1 = scmp.lt.s32.totalorder %s1507_s17, 5 }
  0x14   : > { %s2160_s2 = sld [smem:[#allocation26_spill]]  ;;  %p1603_p2 = scmp.eq.s32.totalorder %s1118_s19, 0 }
  0x15   : > { %p1607_p3 = pnand %p1120_p0, %p275_p1  ;;  %s2163_s5 = sld [smem:[#allocation28_spill]] }
  0x16   : > { %s2161_s20 = scalar_select %p1603_p2, 1, 0 }
  0x17   : > { %s2162_s21 = scalar_select %p1607_p3, 1, 0 }
  0x18   : > { %p1273_p4 = pneg %p1607_p3 }
  0x1a   : > { %s299_s18 = sshll.u32 %s2160_s2, 4  ;;  %p1618_p5 = pnand %p1603_p2, %p1273_p4  ;;  %s300_s18 = int_to_ptr.vmem [resolvable:$true] %s299_s18 }
  0x1b   : > { %s324_s24 = sshll.u32 %s2163_s5, 4  ;;  %s1363_s26 = scalar_lea.vmem %s300_s18, 16  ;;  %s325_s24 = int_to_ptr.vmem [resolvable:$true] %s324_s24 }
  0x1c   : > { %p1364_p6 = scmp.ne.s32.totalorder %s300_s18, %s1363_s26  ;;  %p1624_p7 = pneg %p1618_p5 }
  0x1d   : > { %p1371_p10 = scmp.lt.s32.totalorder %s300_s18, %s300_s18  ;;  %p1372_p11 = scmp.lt.s32.totalorder %s1363_s26, %s1363_s26 }
  0x1e   : > { %p1366_p8 = pnand %p1624_p7, %p1364_p6 }
  0x1f   : > { %p1373_p12 = por %p1372_p11, %p1371_p10 }
  0x20   : > { %p1367_p9 = pneg %p1366_p8 }
  0x22   : > { %p1374_p13 = pnand %p1373_p12, %p1367_p9 }
  0x24   : > { %1377 = shalt.err (!%p1374_p13)
}
  0x25   : > { %s1509_s28 = smov [#allocation6]   ;;  %s1378_s29 = scalar_lea.vmem %s325_s24, 16 }
  0x26   : > { %1279 = dma.vmem_to_smem (!%p1618_p5), %s300_s18, 16, %s1509_s28, [#allocation7]  }
  0x27   : > { %p1379_p0 = scmp.ne.s32.totalorder %s325_s24, %s1378_s29  ;;  %p1386_p2 = scmp.lt.s32.totalorder %s325_s24, %s325_s24 }
  0x28   : > { %p1387_p3 = scmp.lt.s32.totalorder %s1378_s29, %s1378_s29 }
  0x29   : > { %p1381_p1 = pnand %p1379_p0, %p1624_p7 }
  0x2a   : > { %p1388_p6 = por %p1387_p3, %p1386_p2 }
  0x2b   : > { %p1382_p4 = pneg %p1381_p1 }
  0x2d   : > { %p1389_p8 = pnand %p1388_p6, %p1382_p4 }
  0x2f   : > { %1392 = shalt.err (!%p1389_p8)
}
  0x30   : > { %s1510_s30 = smov [#allocation9]   ;;  %s40_s10 = sadd.s32 1, %s1499_s15 }
  0x31   : > { %1285 = dma.vmem_to_smem (!%p1618_p5), %s325_s24, 16, %s1510_s30, [#allocation10]  }
  0x32   : > { %p42_p9 = scmp.ge.s32.totalorder %s40_s10, 2  ;;  %s44_s11 = sadd.s32 1, %s1503_s16 }
  0x33   : > { %s2166_s1 = sld [smem:[#allocation25_spill]] }
  0x34   : > { %s2184_s10 = smov (%p42_p9, %s40_s10), 0  ;;  %s2186_s11 = smov (!%p42_p9, %s44_s11), %s1503_s16 }
  0x35   : > { %2167 = sst [smem:[#allocation21_spill]] %s2184_s10  ;;  %p46_p2 = scmp.ge.s32.totalorder %s2186_s11, 2 }
  0x36   : > { %s2168_s3 = sld [smem:[#allocation27_spill]] }
  0x39   : > { %s288_s8 = sshll.u32 %s2166_s1, 4  ;;  %s289_s8 = int_to_ptr.vmem [resolvable:$true] %s288_s8 }
  0x3a   : > { %s1393_s23 = scalar_lea.vmem %s289_s8, 16  ;;  %p1401_p12 = scmp.lt.s32.totalorder %s289_s8, %s289_s8 }
  0x3b   : > { %p1394_p3 = scmp.ne.s32.totalorder %s289_s8, %s1393_s23  ;;  %p1402_p13 = scmp.lt.s32.totalorder %s1393_s23, %s1393_s23 }
  0x3c   : > { %s310_s22 = sshll.u32 %s2168_s3, 4  ;;  %s311_s22 = int_to_ptr.vmem [resolvable:$true] %s310_s22 }
  0x3d   : > { %p1396_p10 = pnand %p1394_p3, %p1624_p7  ;;  %p1403_p0 = por %p1402_p13, %p1401_p12 }
  0x3f   : > { %p1397_p11 = pneg %p1396_p10 }
  0x41   : > { %p1404_p1 = pnand %p1403_p0, %p1397_p11 }
  0x43   : > { %1407 = shalt.err (!%p1404_p1)
}
  0x44   : > { %s1511_s24 = smov [#allocation4]   ;;  %s2188_s11 = smov (%p46_p2, %s2186_s11), 0 }
  0x45   : > { %1276 = dma.vmem_to_smem (!%p1618_p5), %s289_s8, 16, %s1511_s24, [#allocation5]  }
  0x46   : > { %2169 = sst [smem:[#allocation22_spill]] %s2188_s11  ;;  %s1408_s30 = scalar_lea.vmem %s311_s22, 16 }
  0x47   : > { %s2170_s6 = sld [smem:[#allocation29_spill]]  ;;  %p1409_p4 = scmp.ne.s32.totalorder %s311_s22, %s1408_s30 }
  0x48   : > { %p1416_p9 = scmp.lt.s32.totalorder %s311_s22, %s311_s22  ;;  %p1417_p3 = scmp.lt.s32.totalorder %s1408_s30, %s1408_s30 }
  0x49   : > { %p1411_p6 = pnand %p1409_p4, %p1624_p7 }
  0x4a   : > { %p1418_p10 = por %p1417_p3, %p1416_p9 }
  0x4b   : > { %p1412_p8 = pneg %p1411_p6 }
  0x4d   : > { %s335_s29 = sshll.u32 %s2170_s6, 4  ;;  %p1419_p11 = pnand %p1418_p10, %p1412_p8  ;;  %s336_s29 = int_to_ptr.vmem [resolvable:$true] %s335_s29 }
  0x4f   : > { %1422 = shalt.err (!%p1419_p11)
}
  0x50   : > { %s1512_s12 = smov [#allocation8]   ;;  %s1423_s4 = scalar_lea.vmem %s336_s29, 16 }
  0x51   : > { %1282 = dma.vmem_to_smem (!%p1618_p5), %s311_s22, 16, %s1512_s12, [#allocation7]  }
  0x52   : > { %p1424_p2 = scmp.ne.s32.totalorder %s336_s29, %s1423_s4  ;;  %p1431_p0 = scmp.lt.s32.totalorder %s336_s29, %s336_s29 }
  0x53   : > { %p1432_p1 = scmp.lt.s32.totalorder %s1423_s4, %s1423_s4 }
  0x54   : > { %p1426_p12 = pnand %p1424_p2, %p1624_p7 }
  0x55   : > { %p1433_p4 = por %p1432_p1, %p1431_p0 }
  0x56   : > { %p1427_p13 = pneg %p1426_p12 }
  0x58   : > { %p1434_p6 = pnand %p1433_p4, %p1427_p13 }
  0x5a   : > { %1437 = shalt.err (!%p1434_p6)
}
  0x5b   : > { %s1513_s8 = smov [#allocation11]   ;;  %s2171_s7 = sld [smem:[#allocation30_spill]] }
  0x5c   : > { %1288 = dma.vmem_to_smem (!%p1618_p5), %s336_s29, 16, %s1513_s8, [#allocation10]  }
  0x61   : > { %s346_s22 = sshll.u32 %s2171_s7, 4  ;;  %s347_s22 = int_to_ptr.vmem [resolvable:$true] %s346_s22 }
  0x62   : > { %s1438_s23 = scalar_lea.vmem %s347_s22, 16  ;;  %p1446_p10 = scmp.lt.s32.totalorder %s347_s22, %s347_s22 }
  0x63   : > { %p1439_p8 = scmp.ne.s32.totalorder %s347_s22, %s1438_s23  ;;  %p1447_p11 = scmp.lt.s32.totalorder %s1438_s23, %s1438_s23 }
  0x65   : > { %p1441_p9 = pnand %p1439_p8, %p1624_p7  ;;  %p1448_p2 = por %p1447_p11, %p1446_p10 }
  0x67   : > { %p1442_p3 = pneg %p1441_p9 }
  0x69   : > { %p1449_p12 = pnand %p1448_p2, %p1442_p3 }
  0x6b   : > { %1452 = shalt.err (!%p1449_p12)
}
  0x6c   : > { %s1514_s24 = smov [#allocation12]   ;;  %p2172_p13 = scmp.ne.s32.totalorder %s2162_s21, 0 }
  0x6d   : > { %1291 = dma.vmem_to_smem (!%p1618_p5), %s347_s22, 16, %s1514_s24, [#allocation13]  }
  0x6e   : > { %376 = sbr.rel (%p2172_p13) target bundleno = 380 (0x17c), region = 56 }
  0x73   : > { %p2173_p0 = scmp.ne.s32.totalorder %s2161_s20, 0 }
  0x75   : > { %1474 = dma.done.wait (%p2173_p0), [#allocation5], 16  }
  0x76   : > { %1476 = vsyncadd (%p2173_p0), [#allocation5], 4294967280 }
  0x77   : > { %1478 = dma.done.wait (%p2173_p0), [#allocation7], 32  }
  0x78   : > { %1480 = vsyncadd (%p2173_p0), [#allocation7], 4294967264 }
  0x79   : > { %1482 = dma.done.wait (%p2173_p0), [#allocation10], 32  }
  0x7a   : > { %1484 = vsyncadd (%p2173_p0), [#allocation10], 4294967264 }
  0x7b   : > { %1486 = dma.done.wait (%p2173_p0), [#allocation13], 16  }
  0x7c   : > { %1488 = vsyncadd (%p2173_p0), [#allocation13], 4294967280 }
  0x7d   : > { %402 = sfence }
  0x7e   : > { %p442_p5 = scmp.lt.s32.totalorder %s1495_s14, 1  ;;  %p444_p7 = scmp.lt.s32.totalorder %s1491_s13, 1  ;;  %v1515_v0 = vmov 0.0  }
  0x7f   : > { %s2174_s0 = sld [smem:[#allocation24_spill]]  ;;  %p1139_p1 = scmp.ne.s32.totalorder %s1495_s14, 0 }
  0x80   : > { %s443_s21 = scalar_select %p442_p5, %s1495_s14, 1 }
  0x81   : > { %s2190_s13 = smov (!%p444_p7, %s1491_s13), 1  ;;  %s2176_s9 = sld [smem:[#allocation31_spill]] }
  0x82   : > { %s1135_s25 = sshll.u32 %s443_s21, 1  ;;  %s1708_s8 = sld [smem:[#allocation4 + $0x2]] (!%p1139_p1) }
  0x83   : > { %s450_s27 = sadd.s32 %s1135_s25, %s2190_s13  ;;  %s1706_s13 = sld [smem:[#allocation4]] (!%p1139_p1) }
  0x84   : > { %s1136_s26 = sshll.u32 %s450_s27, 3  ;;  %469 = sbr.rel (%p1139_p1) target bundleno = 263 (0x107), region = 88 }
  0x85   : > { %s1696_s30 = scalar_lea.vmem %s2174_s0, %s1136_s26  ;;  %s1710_s18 = sld [smem:[#allocation4 + $0x4]] (!%p1139_p1) }
  0x86   : > { %2175 = sst [smem:[#allocation23_spill]] %s1696_s30 }
  0x87   : > { %s1701_s4 = scalar_lea.vmem %s2176_s9, %s1136_s26  ;;  %s1712_s19 = sld [smem:[#allocation4 + $0x6]] (!%p1139_p1) }
  0x88   : > { %465 = vst [vmem:[%s1701_s4] sm:$0xff] %v1515_v0  ;;  %s1714_s22 = sld [smem:[#allocation4 + $0x8]] (!%p1139_p1) }
  0x89   : > { %v537_v1 = vld [vmem:[%s1696_s30] sm:$0xff]  ;;  %s1716_s23 = sld [smem:[#allocation4 + $0xa]]  ;;  %v547_v9 = vstv %s1706_s13  ;;  %v558_v10 = vstv %s1708_s8 }
  0x8a   : > { %v542_v2 = vsub.f32 1.0, %v537_v1  ;;  %v538_v3 = vadd.f32 1e-30, %v537_v1  ;;  %s1718_s24 = sld [smem:[#allocation4 + $0xc]] }
  0x8b   : > { %s1720_s21 = sld [smem:[#allocation4 + $0xe]]  ;;  %v570_v11 = vstv %s1710_s18 }
  0x8c   : > { %v543_v4 = vadd.f32 1e-30, %v542_v2  ;;  %1351 = vlog2.f32 %v538_v3  ;;  %s1722_s25 = sld [smem:[#allocation4 + $0x10]] }
  0x8d   : > { %s1724_s27 = sld [smem:[#allocation4 + $0x12]]  ;;  %v582_v13 = vstv %s1712_s19 }
  0x8e   : > { %1353 = vlog2.f32 %v543_v4  ;;  %s1726_s26 = sld [smem:[#allocation4 + $0x14]]  ;;  %v594_v14 = vstv %s1714_s22 }
  0x8f   : > { %s1728_s28 = sld [smem:[#allocation4 + $0x16]]  ;;  %v606_v15 = vstv %s1716_s23 }
  0x90   : > { %s1730_s29 = sld [smem:[#allocation4 + $0x18]]  ;;  %v618_v17 = vstv %s1718_s24 }
  0x91   : > { %s1732_s12 = sld [smem:[#allocation4 + $0x1a]]  ;;  %v630_v18 = vstv %s1720_s21 }
  0x92   : > { %s1734_s20 = sld [smem:[#allocation4 + $0x1c]]  ;;  %v642_v19 = vstv %s1722_s25 }
  0x93   : > { %s1736_s0 = sld [smem:[#allocation4 + $0x1e]]  ;;  %v654_v22 = vstv %s1724_s27 }
  0x94   : > { %s1738_s1 = sld [smem:[#allocation4 + $0x1]]  ;;  %v666_v23 = vstv %s1726_s26 }
  0x95   : > { %s1740_s2 = sld [smem:[#allocation4 + $0x3]]  ;;  %v678_v25 = vstv %s1728_s28 }
  0x96   : > { %s1742_s3 = sld [smem:[#allocation4 + $0x5]]  ;;  %v690_v26 = vstv %s1730_s29 }
  0x97   : > { %s1744_s5 = sld [smem:[#allocation4 + $0x7]]  ;;  %v702_v27 = vstv %s1732_s12 }
  0x98   : > { %s1746_s6 = sld [smem:[#allocation4 + $0x9]]  ;;  %v714_v31 = vstv %s1734_s20 }
  0x99   : > { %v1352_v5 = vpop.eup %1351  ;;  %s1748_s7 = sld [smem:[#allocation4 + $0xb]] }
  0x9a   : > { %s1750_s9 = sld [smem:[#allocation4 + $0xd]]  ;;  %v540_v7 = vmul.f32 0.6931472, %v1352_v5  ;;  %v549_v20 = vstv %s1738_s1 }
  0x9b   : > { %v1354_v6 = vpop.eup %1353  ;;  %s1752_s11 = sld [smem:[#allocation4 + $0xf]]  ;;  %v560_v21 = vstv %s1740_s2 }
  0x9c   : > { %s1754_s10 = sld [smem:[#allocation4 + $0x11]]  ;;  %v545_v8 = vmul.f32 0.6931472, %v1354_v6  ;;  %v1765_v12 = vmul.f32 %v540_v7, %v537_v1  ;;  %v572_v24 = vstv %s1742_s3 }
  0x9d   : > { %s1756_s16 = sld [smem:[#allocation4 + $0x13]]  ;;  %v584_v30 = vstv %s1744_s5 }
  0x9e   : > { %s1758_s15 = sld [smem:[#allocation4 + $0x15]]  ;;  %v1772_v16 = vmul.f32 %v545_v8, %v542_v2  ;;  %v548_v28 = vmul.f32 %v547_v9, %v1765_v12  ;;  %v559_v29 = vmul.f32 %v558_v10, %v1765_v12  ;;  %v596_v34 = vstv %s1746_s6 }
  0x9f   : > { %s1763_s17 = sld [smem:[#allocation4 + $0x17]]  ;;  %v608_v35 = vstv %s1748_s7  ;;  %v571_v36 = vmul.f32 %v570_v11, %v1765_v12  ;;  %v583_v38 = vmul.f32 %v582_v13, %v1765_v12  ;;  %v595_v39 = vmul.f32 %v594_v14, %v1765_v12 }
  0xa0   : > { %s1770_s30 = sld [smem:[#allocation4 + $0x19]]  ;;  %v550_v32 = vmul.f32 %v549_v20, %v1772_v16  ;;  %v561_v33 = vmul.f32 %v560_v21, %v1772_v16  ;;  %v573_v37 = vmul.f32 %v572_v24, %v1772_v16  ;;  %v585_v40 = vmul.f32 %v584_v30, %v1772_v16 }
  0xa1   : > { %s1777_s13 = sld [smem:[#allocation4 + $0x1b]]  ;;  %v607_v41 = vmul.f32 %v606_v15, %v1765_v12  ;;  %v619_v42 = vmul.f32 %v618_v17, %v1765_v12  ;;  %v631_v43 = vmul.f32 %v630_v18, %v1765_v12  ;;  %v597_v44 = vmul.f32 %v596_v34, %v1772_v16 }
  0xa2   : > { %s1783_s8 = sld [smem:[#allocation6]]  ;;  %v609_v45 = vmul.f32 %v608_v35, %v1772_v16  ;;  %v620_v46 = vstv %s1750_s9  ;;  %v643_v47 = vmul.f32 %v642_v19, %v1765_v12  ;;  %v551_v48 = vadd.f32 %v550_v32, %v548_v28 }
  0xa3   : > { %s1789_s18 = sld [smem:[#allocation6 + $0x1]]  ;;  %v562_v49 = vadd.f32 %v561_v33, %v559_v29  ;;  %v655_v50 = vmul.f32 %v654_v22, %v1765_v12  ;;  %v667_v51 = vmul.f32 %v666_v23, %v1765_v12  ;;  %v574_v52 = vadd.f32 %v573_v37, %v571_v36 }
  0xa4   : > { %s1795_s1 = sld [smem:[#allocation6 + $0x2]]  ;;  %v632_v53 = vstv %s1752_s11  ;;  %v679_v54 = vmul.f32 %v678_v25, %v1765_v12  ;;  %v1828_v55 = vmul.f32 %v690_v26, %v1765_v12  ;;  %v586_v57 = vadd.f32 %v585_v40, %v583_v38 }
  0xa5   : > { %s1801_s2 = sld [smem:[#allocation6 + $0x3]]  ;;  %v621_v58 = vmul.f32 %v620_v46, %v1772_v16  ;;  %v1835_v59 = vmul.f32 %v702_v27, %v1765_v12  ;;  %v598_v61 = vadd.f32 %v597_v44, %v595_v39  ;;  %v610_v62 = vadd.f32 %v609_v45, %v607_v41 }
  0xa6   : > { %s1807_s3 = sld [smem:[#allocation6 + $0x4]]  ;;  %v1841_v63 = vmul.f32 %v714_v31, %v1765_v12  ;;  %v633_v1 = vmul.f32 %v632_v53, %v1772_v16  ;;  %v644_v2 = vstv %s1754_s10  ;;  %v656_v3 = vstv %s1756_s16 }
  0xa7   : > { %s1813_s5 = sld [smem:[#allocation6 + $0x5]]  ;;  %v668_v7 = vstv %s1758_s15  ;;  %v622_v9 = vadd.f32 %v621_v58, %v619_v42  ;;  %v680_v10 = vstv %s1763_s17  ;;  %v726_v11 = vstv %s1736_s0 }
  0xa8   : > { %s1819_s6 = sld [smem:[#allocation4 + $0x1d]]  ;;  %v552_v56 = vstv %s1783_s8  ;;  %v645_v15 = vmul.f32 %v644_v2, %v1772_v16  ;;  %v657_v17 = vmul.f32 %v656_v3, %v1772_v16  ;;  %v669_v20 = vmul.f32 %v668_v7, %v1772_v16 }
  0xa9   : > { %s1823_s7 = sld [smem:[#allocation4 + $0x1f]]  ;;  %v563_v60 = vstv %s1789_s18  ;;  %v553_v4 = vadd.f32 %v552_v56, %v551_v48  ;;  %v692_v21 = vstv %s1770_s30  ;;  %v634_v23 = vadd.f32 %v633_v1, %v631_v43 }
  0xaa   : > { %s1830_s9 = sld [smem:[#allocation6 + $0x6]]  ;;  %v575_v0 = vstv %s1795_s1  ;;  %v564_v8 = vadd.f32 %v563_v60, %v562_v49  ;;  %v681_v24 = vmul.f32 %v680_v10, %v1772_v16  ;;  %v1873_v25 = vmul.f32 %v726_v11, %v1765_v12 }
  0xab   : > { %s1837_s11 = sld [smem:[#allocation6 + $0x7]]  ;;  %v587_v5 = vstv %s1801_s2  ;;  %v576_v13 = vadd.f32 %v575_v0, %v574_v52  ;;  %v554_v22 = vmul.f32 0.2, %v553_v4  ;;  %v704_v29 = vstv %s1777_s13 }
  0xac   : > { %s1843_s19 = sld [smem:[#allocation6 + $0x8]]  ;;  %v599_v6 = vstv %s1807_s3  ;;  %v588_v18 = vadd.f32 %v587_v5, %v586_v57  ;;  %v565_v26 = vmul.f32 0.2, %v564_v8  ;;  %v646_v31 = vadd.f32 %v645_v15, %v643_v47 }
  0xad   : > { %s1849_s22 = sld [smem:[#allocation6 + $0x9]]  ;;  %v611_v14 = vstv %s1813_s5  ;;  %v1865_v19 = vadd.f32 %v599_v6, %v598_v61  ;;  %v577_v30 = vmul.f32 0.2, %v576_v13  ;;  %v658_v32 = vadd.f32 %v657_v17, %v655_v50 }
  0xae   : > { %s1854_s23 = sld [smem:[#allocation6 + $0xa]]  ;;  %v1877_v27 = vadd.f32 %v611_v14, %v610_v62  ;;  %v693_v33 = vmul.f32 %v692_v21, %v1772_v16  ;;  %v589_v12 = vmul.f32 0.2, %v588_v18  ;;  %v670_v36 = vadd.f32 %v669_v20, %v667_v51 }
  0xaf   : > { %s1858_s24 = sld [smem:[#allocation6 + $0xb]]  ;;  %v601_v34 = vmul.f32 0.2, %v1865_v19  ;;  %v555_v37 = vmax.f32 %v553_v4, %v554_v22  ;;  %v682_v39 = vadd.f32 %v681_v24, %v679_v54  ;;  %v705_v40 = vmul.f32 %v704_v29, %v1772_v16 }
  0xb0   : > { %s1863_s16 = sld [smem:[#allocation6 + $0xc]]  ;;  %v623_v28 = vstv %s1830_s9  ;;  %v566_v41 = vmax.f32 %v564_v8, %v565_v26  ;;  %v613_v42 = vmul.f32 0.2, %v1877_v27  ;;  %v716_v44 = vstv %s1819_s6 }
  0xb1   : > { %s1869_s15 = sld [smem:[#allocation6 + $0xd]]  ;;  %v635_v35 = vstv %s1837_s11  ;;  %v1890_v38 = vadd.f32 %v623_v28, %v622_v9  ;;  %v578_v45 = vmax.f32 %v576_v13, %v577_v30  ;;  %v694_v47 = vadd.f32 %v693_v33, %v1828_v55 }
  0xb2   : > { %s1875_s0 = sld [smem:[#allocation8]]  ;;  %v647_v43 = vstv %s1843_s19  ;;  %v636_v46 = vadd.f32 %v635_v35, %v634_v23  ;;  %v728_v48 = vstv %s1823_s7  ;;  %v590_v50 = vmax.f32 %v588_v18, %v589_v12 }
  0xb3   : > { %s1881_s17 = sld [smem:[#allocation8 + $0x1]]  ;;  %v602_v51 = vmax.f32 %v1865_v19, %v601_v34  ;;  %v659_v52 = vstv %s1849_s22  ;;  %v625_v56 = vmul.f32 0.2, %v1890_v38  ;;  %v648_v57 = vadd.f32 %v647_v43, %v646_v31 }
  0xb4   : > { %s1884_s10 = sld [smem:[#allocation8 + $0x2]]  ;;  %v614_v60 = vmax.f32 %v1877_v27, %v613_v42  ;;  %v671_v61 = vstv %s1854_s23  ;;  %v637_v1 = vmul.f32 0.2, %v636_v46  ;;  %v660_v2 = vadd.f32 %v659_v52, %v658_v32 }
  0xb5   : > { %s1888_s30 = sld [smem:[#allocation8 + $0x3]]  ;;  %v683_v6 = vstv %s1858_s24  ;;  %v672_v8 = vadd.f32 %v671_v61, %v670_v36  ;;  %v706_v9 = vadd.f32 %v705_v40, %v1835_v59  ;;  %v717_v10 = vmul.f32 %v716_v44, %v1772_v16 }
  0xb6   : > { %s1893_s21 = sld [smem:[#allocation8 + $0x4]]  ;;  %v626_v14 = vmax.f32 %v1890_v38, %v625_v56  ;;  %v649_v15 = vmul.f32 0.2, %v648_v57  ;;  %v684_v18 = vadd.f32 %v683_v6, %v682_v39  ;;  %v695_v19 = vstv %s1863_s16 }
  0xb7   : > { %s1898_s25 = sld [smem:[#allocation8 + $0x5]]  ;;  %v729_v20 = vmul.f32 %v728_v48, %v1772_v16  ;;  %v638_v22 = vmax.f32 %v636_v46, %v637_v1  ;;  %v661_v23 = vmul.f32 0.2, %v660_v2  ;;  %v673_v26 = vmul.f32 0.2, %v672_v8 }
  0xb8   : > { %s1902_s27 = sld [smem:[#allocation8 + $0x6]]  ;;  %v556_v49 = vstv %s1875_s0  ;;  %v707_v27 = vstv %s1869_s15  ;;  %v718_v28 = vadd.f32 %v717_v10, %v1841_v63  ;;  %v650_v31 = vmax.f32 %v648_v57, %v649_v15 }
  0xb9   : > { %s1907_s26 = sld [smem:[#allocation8 + $0x7]]  ;;  %v557_v53 = vmul.f32 %v556_v49, %v555_v37  ;;  %v567_v54 = vstv %s1881_s17  ;;  %v696_v32 = vadd.f32 %v695_v19, %v694_v47  ;;  %v685_v33 = vmul.f32 0.2, %v684_v18 }
  0xba   : > { %s1911_s28 = sld [smem:[#allocation6 + $0xe]]  ;;  %v568_v55 = vmul.f32 %v567_v54, %v566_v41  ;;  %v579_v58 = vstv %s1884_s10  ;;  %v730_v34 = vadd.f32 %v729_v20, %v1873_v25  ;;  %v662_v37 = vmax.f32 %v660_v2, %v661_v23 }
  0xbb   : > { %s1916_s29 = sld [smem:[#allocation8 + $0x8]]  ;;  %v580_v62 = vmul.f32 %v579_v58, %v578_v45  ;;  %v591_v0 = vstv %s1888_s30  ;;  %v708_v38 = vadd.f32 %v707_v27, %v706_v9  ;;  %v674_v39 = vmax.f32 %v672_v8, %v673_v26 }
  0xbc   : > { %s1919_s12 = sld [smem:[#allocation6 + $0xf]]  ;;  %v569_v3 = vadd.f32 %v568_v55, %v557_v53  ;;  %v592_v4 = vmul.f32 %v591_v0, %v590_v50  ;;  %v603_v5 = vstv %s1893_s21  ;;  %v697_v43 = vmul.f32 0.2, %v696_v32 }
  0xbd   : > { %s1923_s20 = sld [smem:[#allocation8 + $0x9]]  ;;  %v615_v7 = vstv %s1898_s25  ;;  %v604_v13 = vmul.f32 %v603_v5, %v602_v51  ;;  %v686_v46 = vmax.f32 %v684_v18, %v685_v33  ;;  %v709_v48 = vmul.f32 0.2, %v708_v38 }
  0xbe   : > { %v581_v11 = vadd.f32 %v580_v62, %v569_v3  ;;  %s1929_s13 = sld [smem:[#allocation8 + $0xa]]  ;;  %v627_v17 = vstv %s1902_s27  ;;  %v616_v59 = vmul.f32 %v615_v7, %v614_v60  ;;  %v698_v53 = vmax.f32 %v696_v32, %v697_v43 }
  0xbf   : > { %s1934_s8 = sld [smem:[#allocation8 + $0xb]]  ;;  %v639_v24 = vstv %s1907_s26  ;;  %v628_v30 = vmul.f32 %v627_v17, %v626_v14  ;;  %v710_v58 = vmax.f32 %v708_v38, %v709_v48 }
  0xc0   : > { %v593_v21 = vadd.f32 %v592_v4, %v581_v11  ;;  %s1939_s18 = sld [smem:[#allocation8 + $0xc]]  ;;  %v719_v12 = vstv %s1911_s28  ;;  %v640_v36 = vmul.f32 %v639_v24, %v638_v22  ;;  %v536_v24 = vld [vmem:[%s1701_s4] sm:$0xff] }
  0xc1   : > { %v651_v16 = vstv %s1916_s29  ;;  %s1944_s1 = sld [smem:[#allocation8 + $0xd]]  ;;  %v720_v44 = vadd.f32 %v719_v12, %v718_v28 }
  0xc2   : > { %v605_v29 = vadd.f32 %v604_v13, %v593_v21  ;;  %v731_v40 = vstv %s1919_s12  ;;  %v652_v42 = vmul.f32 %v651_v16, %v650_v31  ;;  %s1199_s2 = sld [smem:[#allocation8 + $0xe]] }
  0xc3   : > { %v663_v63 = vstv %s1923_s20  ;;  %v732_v49 = vadd.f32 %v731_v40, %v730_v34  ;;  %s1200_s3 = sld [smem:[#allocation8 + $0xf]]  ;;  %v721_v54 = vmul.f32 0.2, %v720_v44 }
  0xc4   : > { %v617_v35 = vadd.f32 %v616_v59, %v605_v29  ;;  %v675_v45 = vstv %s1929_s13  ;;  %v664_v25 = vmul.f32 %v663_v63, %v662_v37  ;;  %s534_s5 = sld [smem:[#allocation2]] }
  0xc5   : > { %v687_v50 = vstv %s1934_s8  ;;  %v676_v52 = vmul.f32 %v675_v45, %v674_v39  ;;  %v733_v60 = vmul.f32 0.2, %v732_v49  ;;  %v722_v1 = vmax.f32 %v720_v44, %v721_v54 }
  0xc6   : > { %v629_v41 = vadd.f32 %v628_v30, %v617_v35  ;;  %v699_v56 = vstv %s1939_s18  ;;  %v688_v55 = vmul.f32 %v687_v50, %v686_v46 }
  0xc7   : > { %v711_v61 = vstv %s1944_s1  ;;  %v700_v0 = vmul.f32 %v699_v56, %v698_v53  ;;  %v734_v5 = vmax.f32 %v732_v49, %v733_v60 }
  0xc8   : > { %v641_v47 = vadd.f32 %v640_v36, %v629_v41  ;;  %v723_v2 = vstv %s1199_s2  ;;  %v712_v4 = vmul.f32 %v711_v61, %v710_v58 }
  0xc9   : > { %v735_v6 = vstv %s1200_s3  ;;  %v724_v8 = vmul.f32 %v723_v2, %v722_v1 }
  0xca   : > { %v653_v51 = vadd.f32 %v652_v42, %v641_v47  ;;  %s535_s6 = ssub.f32 0.0, %s534_s5  ;;  %v736_v10 = vmul.f32 %v735_v6, %v734_v5 }
  0xcc   : > { %v665_v57 = vadd.f32 %v664_v25, %v653_v51  ;;  %v738_v13 = vstv %s535_s6 }
  0xce   : > { %v677_v62 = vadd.f32 %v676_v52, %v665_v57 }
  0xd0   : > { %v689_v3 = vadd.f32 %v688_v55, %v677_v62 }
  0xd2   : > { %v701_v7 = vadd.f32 %v700_v0, %v689_v3 }
  0xd4   : > { %v713_v9 = vadd.f32 %v712_v4, %v701_v7 }
  0xd6   : > { %v725_v11 = vadd.f32 %v724_v8, %v713_v9 }
  0xd8   : > { %v737_v14 = vadd.f32 %v736_v10, %v725_v11 }
  0xda   : > { %v739_v15 = vsub.f32 %v738_v13, %v737_v14 }
  0xdc   : > { %v741_v17 = vand.u32 2147483647, %v739_v15  ;;  %v740_v59 = vmax.f32 %v739_v15, 0.0 }
  0xde   : > { %v742_v18 = vsub.f32 0.0, %v741_v17 }
  0xe0   : > { %v743_v19 = vmul.f32 1.442695, %v742_v18 }
  0xe2   : > { %1355 = vpow2.f32 %v743_v19 }
  0xef   : > { %v1356_v20 = vpop.eup %1355 }
  0xf0   : > { %v745_v21 = vadd.f32 1.0, %v1356_v20 }
  0xf2   : > { %1357 = vlog2.f32 %v745_v21 }
  0xff   : > { %v1358_v22 = vpop.eup %1357 }
 0x100   : > { %v747_v23 = vmul.f32 0.6931472, %v1358_v22 }
 0x102   : > { %v748_v26 = vadd.f32 %v747_v23, %v740_v59 }
 0x104   : > { %v750_v27 = vadd.f32 %v748_v26, %v536_v24 }
 0x106   : > { %751 = vst [vmem:[%s1701_s4] sm:$0xff] %v750_v27 }
 0x107 PF: > { %p1201_p4 = scmp.ne.s32.totalorder %s1495_s14, 1 }
 0x108   : > { %s756_s7 = sld [smem:[#allocation9]] (!%p1201_p4) }
 0x109   : > { %755 = sbr.rel (%p1201_p4) target bundleno = 380 (0x17c), region = 92  ;;  %s1955_s9 = sld [smem:[#allocation9 + $0x1]] (!%p1201_p4) }
 0x10a   : > { %s1957_s11 = sld [smem:[#allocation9 + $0x2]] (!%p1201_p4) }
 0x10b   : > { %s1959_s19 = sld [smem:[#allocation9 + $0x3]] (!%p1201_p4) }
 0x10c   : > { %s2177_s22 = sld [smem:[#allocation23_spill]] (!%p1201_p4) }
 0x10d   : > { %s1961_s23 = sld [smem:[#allocation9 + $0x4]] (!%p1201_p4) }
 0x10e   : > { %s1963_s24 = sld [smem:[#allocation9 + $0x5]]  ;;  %v808_v29 = vstv %s756_s7 }
 0x10f   : > { %s1965_s16 = sld [smem:[#allocation9 + $0x6]]  ;;  %v816_v30 = vstv %s1955_s9 }
 0x110   : > { %s1967_s15 = sld [smem:[#allocation9 + $0x7]]  ;;  %v825_v31 = vstv %s1957_s11 }
 0x111   : > { %s1969_s0 = sld [smem:[#allocation9 + $0x8]]  ;;  %v834_v16 = vstv %s1959_s19 }
 0x112   : > { %s1971_s14 = sld [smem:[#allocation9 + $0x9]]  ;;  %v1988_v28 = vld [vmem:[%s2177_s22] sm:$0xff] }
 0x113   : > { %s1973_s17 = sld [smem:[#allocation9 + $0xa]]  ;;  %v809_v32 = vmul.f32 %v808_v29, %v1988_v28  ;;  %v843_v33 = vstv %s1961_s23  ;;  %v817_v34 = vmul.f32 %v816_v30, %v1988_v28  ;;  %v826_v36 = vmul.f32 %v825_v31, %v1988_v28 }
 0x114   : > { %s1975_s10 = sld [smem:[#allocation9 + $0xb]]  ;;  %v852_v37 = vstv %s1963_s24  ;;  %v835_v63 = vmul.f32 %v834_v16, %v1988_v28  ;;  %v844_v39 = vmul.f32 %v843_v33, %v1988_v28 }
 0x115   : > { %s1977_s30 = sld [smem:[#allocation9 + $0xc]]  ;;  %v853_v44 = vmul.f32 %v852_v37, %v1988_v28  ;;  %v861_v45 = vstv %s1965_s16 }
 0x116   : > { %s1979_s21 = sld [smem:[#allocation9 + $0xd]]  ;;  %v870_v49 = vstv %s1967_s15  ;;  %v862_v52 = vmul.f32 %v861_v45, %v1988_v28 }
 0x117   : > { %s772_s25 = sld [smem:[#allocation11]]  ;;  %v879_v50 = vstv %s1969_s0  ;;  %v871_v60 = vmul.f32 %v870_v49, %v1988_v28 }
 0x118   : > { %s1217_s27 = sld [smem:[#allocation11 + $0x1]]  ;;  %v888_v53 = vstv %s1971_s14  ;;  %v880_v61 = vmul.f32 %v879_v50, %v1988_v28 }
 0x119   : > { %s1981_s26 = sld [smem:[#allocation11 + $0x2]]  ;;  %v897_v55 = vstv %s1973_s17  ;;  %v889_v6 = vmul.f32 %v888_v53, %v1988_v28 }
 0x11a   : > { %s1983_s28 = sld [smem:[#allocation11 + $0x3]]  ;;  %v906_v62 = vstv %s1975_s10  ;;  %v898_v7 = vmul.f32 %v897_v55, %v1988_v28 }
 0x11b   : > { %s1985_s29 = sld [smem:[#allocation11 + $0x4]]  ;;  %v915_v3 = vstv %s1977_s30  ;;  %v907_v11 = vmul.f32 %v906_v62, %v1988_v28 }
 0x11c   : > { %s1990_s12 = sld [smem:[#allocation11 + $0x5]]  ;;  %v916_v15 = vmul.f32 %v915_v3, %v1988_v28  ;;  %v924_v17 = vstv %s1979_s21 }
 0x11d   : > { %s1993_s20 = sld [smem:[#allocation9 + $0xe]]  ;;  %v810_v12 = vstv %s772_s25 }
 0x11e   : > { %s1996_s13 = sld [smem:[#allocation9 + $0xf]]  ;;  %v818_v35 = vstv %s1217_s27  ;;  %v811_v40 = vadd.f32 %v810_v12, %v809_v32 }
 0x11f   : > { %s2001_s8 = sld [smem:[#allocation11 + $0x6]]  ;;  %v827_v38 = vstv %s1981_s26  ;;  %v819_v43 = vadd.f32 %v818_v35, %v817_v34 }
 0x120   : > { %s2004_s18 = sld [smem:[#allocation11 + $0x7]]  ;;  %v836_v41 = vstv %s1983_s28  ;;  %v828_v46 = vadd.f32 %v827_v38, %v826_v36  ;;  %v812_v51 = vmul.f32 0.2, %v811_v40 }
 0x121   : > { %s2008_s1 = sld [smem:[#allocation11 + $0x8]]  ;;  %v845_v42 = vstv %s1985_s29  ;;  %v837_v25 = vadd.f32 %v836_v41, %v835_v63  ;;  %v820_v54 = vmul.f32 0.2, %v819_v43  ;;  %v925_v63 = vmul.f32 %v924_v17, %v1988_v28 }
 0x122   : > { %s2013_s2 = sld [smem:[#allocation11 + $0x9]]  ;;  %v854_v47 = vstv %s1990_s12  ;;  %v2026_v48 = vadd.f32 %v845_v42, %v844_v39  ;;  %v829_v58 = vmul.f32 0.2, %v828_v46  ;;  %v813_v4 = vmax.f32 %v811_v40, %v812_v51 }
 0x123   : > { %s2017_s3 = sld [smem:[#allocation11 + $0xa]]  ;;  %v2036_v56 = vadd.f32 %v854_v47, %v853_v44  ;;  %v838_v0 = vmul.f32 0.2, %v837_v25  ;;  %v821_v8 = vmax.f32 %v819_v43, %v820_v54  ;;  %v933_v39 = vstv %s1993_s20 }
 0x124   : > { %s2021_s5 = sld [smem:[#allocation11 + $0xb]]  ;;  %v847_v1 = vmul.f32 0.2, %v2026_v48  ;;  %v830_v13 = vmax.f32 %v828_v46, %v829_v58  ;;  %v942_v47 = vstv %s1996_s13  ;;  %v934_v54 = vmul.f32 %v933_v39, %v1988_v28 }
 0x125   : > { %s2024_s6 = sld [smem:[#allocation11 + $0xc]]  ;;  %v863_v57 = vstv %s2001_s8  ;;  %v856_v9 = vmul.f32 0.2, %v2036_v56  ;;  %v839_v19 = vmax.f32 %v837_v25, %v838_v0  ;;  %v943_v0 = vmul.f32 %v942_v47, %v1988_v28 }
 0x126   : > { %s2030_s7 = sld [smem:[#allocation11 + $0xd]]  ;;  %v872_v2 = vstv %s2004_s18  ;;  %v2052_v5 = vadd.f32 %v863_v57, %v862_v52  ;;  %v848_v20 = vmax.f32 %v2026_v48, %v847_v1 }
 0x127   : > { %s2034_s9 = sld [smem:[#allocation12]]  ;;  %v881_v10 = vstv %s2008_s1  ;;  %v873_v14 = vadd.f32 %v872_v2, %v871_v60  ;;  %v857_v29 = vmax.f32 %v2036_v56, %v856_v9 }
 0x128   : > { %s2040_s11 = sld [smem:[#allocation12 + $0x1]]  ;;  %v890_v21 = vstv %s2013_s2  ;;  %v865_v23 = vmul.f32 0.2, %v2052_v5  ;;  %v882_v24 = vadd.f32 %v881_v10, %v880_v61 }
 0x129   : > { %s2045_s19 = sld [smem:[#allocation12 + $0x2]]  ;;  %v899_v30 = vstv %s2017_s3  ;;  %v874_v16 = vmul.f32 0.2, %v873_v14  ;;  %v891_v33 = vadd.f32 %v890_v21, %v889_v6 }
 0x12a   : > { %s2050_s22 = sld [smem:[#allocation12 + $0x3]]  ;;  %v908_v36 = vstv %s2021_s5  ;;  %v900_v38 = vadd.f32 %v899_v30, %v898_v7  ;;  %v866_v42 = vmax.f32 %v2052_v5, %v865_v23  ;;  %v883_v43 = vmul.f32 0.2, %v882_v24 }
 0x12b   : > { %s2056_s23 = sld [smem:[#allocation12 + $0x4]]  ;;  %v909_v45 = vadd.f32 %v908_v36, %v907_v11  ;;  %v917_v46 = vstv %s2024_s6  ;;  %v875_v49 = vmax.f32 %v873_v14, %v874_v16  ;;  %v892_v50 = vmul.f32 0.2, %v891_v33 }
 0x12c   : > { %s2061_s24 = sld [smem:[#allocation12 + $0x5]]  ;;  %v901_v52 = vmul.f32 0.2, %v900_v38  ;;  %v926_v53 = vstv %s2030_s7  ;;  %v884_v55 = vmax.f32 %v882_v24, %v883_v43  ;;  %v918_v58 = vadd.f32 %v917_v46, %v916_v15 }
 0x12d   : > { %s2065_s16 = sld [smem:[#allocation12 + $0x6]]  ;;  %v814_v18 = vstv %s2034_s9  ;;  %v910_v61 = vmul.f32 0.2, %v909_v45  ;;  %v893_v3 = vmax.f32 %v891_v33, %v892_v50 }
 0x12e   : > { %s2070_s15 = sld [smem:[#allocation12 + $0x7]]  ;;  %v815_v59 = vmul.f32 %v814_v18, %v813_v4  ;;  %v822_v22 = vstv %s2040_s11  ;;  %v927_v4 = vadd.f32 %v926_v53, %v925_v63  ;;  %v902_v6 = vmax.f32 %v900_v38, %v901_v52 }
 0x12f   : > { %s2074_s0 = sld [smem:[#allocation11 + $0xe]]  ;;  %v823_v26 = vmul.f32 %v822_v22, %v821_v8  ;;  %v831_v27 = vstv %s2045_s19  ;;  %v919_v10 = vmul.f32 0.2, %v918_v58  ;;  %v911_v14 = vmax.f32 %v909_v45, %v910_v61 }
 0x130   : > { %s2079_s14 = sld [smem:[#allocation12 + $0x8]]  ;;  %v832_v31 = vmul.f32 %v831_v27, %v830_v13  ;;  %v840_v32 = vstv %s2050_s22  ;;  %v928_v17 = vmul.f32 0.2, %v927_v4 }
 0x131   : > { %s2082_s17 = sld [smem:[#allocation11 + $0xf]]  ;;  %v824_v12 = vadd.f32 %v823_v26, %v815_v59  ;;  %v841_v34 = vmul.f32 %v840_v32, %v839_v19  ;;  %v849_v35 = vstv %s2056_s23  ;;  %v920_v59 = vmax.f32 %v918_v58, %v919_v10 }
 0x132   : > { %s2086_s10 = sld [smem:[#allocation12 + $0x9]]  ;;  %v858_v37 = vstv %s2061_s24  ;;  %v850_v41 = vmul.f32 %v849_v35, %v848_v20  ;;  %v929_v27 = vmax.f32 %v927_v4, %v928_v17 }
 0x133   : > { %v833_v40 = vadd.f32 %v832_v31, %v824_v12  ;;  %s2092_s30 = sld [smem:[#allocation12 + $0xa]]  ;;  %v867_v44 = vstv %s2065_s16  ;;  %v859_v48 = vmul.f32 %v858_v37, %v857_v29 }
 0x134   : > { %s2097_s21 = sld [smem:[#allocation12 + $0xb]]  ;;  %v876_v51 = vstv %s2070_s15  ;;  %v868_v57 = vmul.f32 %v867_v44, %v866_v42 }
 0x135   : > { %v842_v25 = vadd.f32 %v841_v34, %v833_v40  ;;  %s2102_s25 = sld [smem:[#allocation12 + $0xc]]  ;;  %v935_v62 = vstv %s2074_s0  ;;  %v877_v2 = vmul.f32 %v876_v51, %v875_v49  ;;  %v806_v51 = vld [vmem:[%s1701_s4] sm:$0xff] }
 0x136   : > { %v885_v60 = vstv %s2079_s14  ;;  %s2107_s27 = sld [smem:[#allocation12 + $0xd]]  ;;  %v936_v11 = vadd.f32 %v935_v62, %v934_v54 }
 0x137   : > { %v851_v56 = vadd.f32 %v850_v41, %v842_v25  ;;  %v944_v7 = vstv %s2082_s17  ;;  %v886_v9 = vmul.f32 %v885_v60, %v884_v55  ;;  %s1245_s26 = sld [smem:[#allocation12 + $0xe]] }
 0x138   : > { %v894_v5 = vstv %s2086_s10  ;;  %v945_v18 = vadd.f32 %v944_v7, %v943_v0  ;;  %s1246_s28 = sld [smem:[#allocation12 + $0xf]]  ;;  %v937_v22 = vmul.f32 0.2, %v936_v11 }
 0x139   : > { %v860_v1 = vadd.f32 %v859_v48, %v851_v56  ;;  %v903_v13 = vstv %s2092_s30  ;;  %v895_v28 = vmul.f32 %v894_v5, %v893_v3  ;;  %s804_s29 = sld [smem:[#allocation3]] }
 0x13a   : > { %v912_v19 = vstv %s2097_s21  ;;  %v904_v21 = vmul.f32 %v903_v13, %v902_v6  ;;  %v946_v29 = vmul.f32 0.2, %v945_v18  ;;  %v938_v16 = vmax.f32 %v936_v11, %v937_v22 }
 0x13b   : > { %v869_v8 = vadd.f32 %v868_v57, %v860_v1  ;;  %v921_v23 = vstv %s2102_s25  ;;  %v913_v26 = vmul.f32 %v912_v19, %v911_v14 }
 0x13c   : > { %v930_v30 = vstv %s2107_s27  ;;  %v922_v32 = vmul.f32 %v921_v23, %v920_v59  ;;  %v947_v35 = vmax.f32 %v945_v18, %v946_v29 }
 0x13d   : > { %v878_v15 = vadd.f32 %v877_v2, %v869_v8  ;;  %v939_v33 = vstv %s1245_s26  ;;  %v931_v34 = vmul.f32 %v930_v30, %v929_v27 }
 0x13e   : > { %v948_v36 = vstv %s1246_s28  ;;  %v940_v38 = vmul.f32 %v939_v33, %v938_v16 }
 0x13f   : > { %v887_v20 = vadd.f32 %v886_v9, %v878_v15  ;;  %s805_s12 = ssub.f32 0.0, %s804_s29  ;;  %v949_v39 = vmul.f32 %v948_v36, %v947_v35 }
 0x141   : > { %v896_v24 = vadd.f32 %v895_v28, %v887_v20  ;;  %v951_v41 = vstv %s805_s12 }
 0x143   : > { %v905_v31 = vadd.f32 %v904_v21, %v896_v24 }
 0x145   : > { %v914_v12 = vadd.f32 %v913_v26, %v905_v31 }
 0x147   : > { %v923_v37 = vadd.f32 %v922_v32, %v914_v12 }
 0x149   : > { %v932_v63 = vadd.f32 %v931_v34, %v923_v37 }
 0x14b   : > { %v941_v40 = vadd.f32 %v940_v38, %v932_v63 }
 0x14d   : > { %v950_v42 = vadd.f32 %v949_v39, %v941_v40 }
 0x14f   : > { %v952_v43 = vsub.f32 %v951_v41, %v950_v42 }
 0x151   : > { %v954_v44 = vand.u32 2147483647, %v952_v43  ;;  %v953_v48 = vmax.f32 %v952_v43, 0.0 }
 0x153   : > { %v955_v45 = vsub.f32 0.0, %v954_v44 }
 0x155   : > { %v956_v46 = vmul.f32 1.442695, %v955_v45 }
 0x157   : > { %1359 = vpow2.f32 %v956_v46 }
 0x164   : > { %v1360_v47 = vpop.eup %1359 }
 0x165   : > { %v958_v25 = vadd.f32 1.0, %v1360_v47 }
 0x167   : > { %1361 = vlog2.f32 %v958_v25 }
 0x174   : > { %v1362_v49 = vpop.eup %1361 }
 0x175   : > { %v960_v50 = vmul.f32 0.6931472, %v1362_v49 }
 0x177   : > { %v961_v52 = vadd.f32 %v960_v50, %v953_v48 }
 0x179   : > { %v963_v53 = vadd.f32 %v961_v52, %v806_v51 }
 0x17b   : > { %964 = vst [vmem:[%s1701_s4] sm:$0xff] %v963_v53 }
 0x17c PF: > { %s2178_s20 = sld [smem:[#allocation20_spill]] }
 0x17d   : > { %s2179_s13 = sld [smem:[#allocation18_spill]] }
 0x17e   : > { %s2180_s14 = sld [smem:[#allocation19_spill]] }
 0x17f   : > { %s2181_s15 = sld [smem:[#allocation21_spill]] }
 0x180   : > { %s2182_s16 = sld [smem:[#allocation22_spill]] }
 0x182   : > { %s25_s17 = sadd.s32 1, %s2178_s20  }
 0x183   : > { %p22_p6 = scmp.ge.s32.totalorder %s25_s17, 6  }
 0x185   :  { %24 = sbr.rel (!%p22_p6) target bundleno = 17 (0x11), region = 123 }
 0x18a   :  { %992 = vsyncpa [#allocation5], 1 }
 0x18b   :  { %994 = vsyncpa [#allocation5 + $0x1], 1 }
 0x18c   :  { %995 = vsyncpa [#allocation7], 1 }
 0x18d   :  { %996 = vsyncpa [#allocation10], 1 }
 0x18e   :  { %997 = vsyncpa [#allocation13], 1 }

</bundles_post_ra>
